<compile_context>
chip_gen: v7x
topology: tpu7x:2x2x1
jax: 0.10.0
libtpu: 0.0.40
codegen_flags: <defaults>
</compile_context>

<pallas_src>
import jax
import jax.numpy as jnp
from jax.experimental import pallas as pl
from jax.experimental.pallas import tpu as pltpu

NEG_BIG = -1e30  # bias for padded vocab lanes -> never win max / argmax


# ---------------------------------------------------------------------------
# Shared GRU cell (PyTorch 2-matmul form, gate order [r | z | n])
# ---------------------------------------------------------------------------

def _gru_cell(x, h, w_ih, w_hh, b_ih, b_hh):
    """x: (B, E), h: (B, H) -> (B, H)."""
    H = h.shape[-1]
    gx = jnp.dot(x, w_ih, preferred_element_type=jnp.float32) + b_ih   # (B, 3H)
    gh = jnp.dot(h, w_hh, preferred_element_type=jnp.float32) + b_hh   # (B, 3H)
    r = jax.nn.sigmoid(gx[:, :H] + gh[:, :H])
    z = jax.nn.sigmoid(gx[:, H:2 * H] + gh[:, H:2 * H])
    n = jnp.tanh(gx[:, 2 * H:] + r * gh[:, 2 * H:])
    return (1.0 - z) * n + z * h


# ---------------------------------------------------------------------------
# Encoder kernel: grid over S-chunks, hidden carried in the resident output
# ---------------------------------------------------------------------------

def encoder_kernel(src_ref, w_ih_ref, w_hh_ref, b_ih_ref, b_hh_ref, h_ref):
    """src_ref: (chunk, B, E) block; h_ref: (B, H) resident accumulator."""
    s = pl.program_id(0)
    chunk = src_ref.shape[0]

    @pl.when(s == 0)
    def _():
        h_ref[...] = jnp.zeros_like(h_ref)          # PyTorch default h0 = 0

    w_ih = w_ih_ref[...]
    w_hh = w_hh_ref[...]
    b_ih = b_ih_ref[...]
    b_hh = b_hh_ref[...]

    def step(i, h):
        return _gru_cell(src_ref[i], h, w_ih, w_hh, b_ih, b_hh)

    h_ref[...] = jax.lax.fori_loop(0, chunk, step, h_ref[...], unroll=True)


# ---------------------------------------------------------------------------
# Decoder kernel: grid over T, h / next-token carried in VMEM scratch,
# per-step logits streamed to the (t, 0, 0) output block.
# ---------------------------------------------------------------------------

def decoder_kernel(tf_ref,                      # (T,) int32 scalar-prefetch (SMEM)
                   tgt_ref, h0_ref, emb_ref,    # (1,B,1) int32, (B,H), (V,E)
                   w_ih_ref, w_hh_ref, b_ih_ref, b_hh_ref,
                   wout_ref, bout_ref,          # (H,Vp), (1,Vp)
                   out_ref,                     # (1, B, Vp)
                   h_scr, tok_scr):             # (B,H) f32, (B,1) int32 scratch
    t = pl.program_id(0)
    _, B, Vp = out_ref.shape
    V = emb_ref.shape[0]

    @pl.when(t == 0)
    def _():
        out_ref[...] = jnp.zeros_like(out_ref)   # outputs[0] is never written
        h_scr[...] = h0_ref[...]
        tok_scr[...] = tgt_ref[0]                # inputs = target[0]

    @pl.when(t > 0)
    def _():
        h = h_scr[...]
        tok = tok_scr[...]                                           # (B, 1)

        # Embedding gather as one-hot @ table (MXU, no dynamic gather op).
        vocab_iota = jax.lax.broadcasted_iota(jnp.int32, (B, V), 1)
        x_oh = (vocab_iota == tok).astype(jnp.float32)               # (B, V)
        x = jnp.dot(x_oh, emb_ref[...], preferred_element_type=jnp.float32)

        h_new = _gru_cell(x, h, w_ih_ref[...], w_hh_ref[...],
                          b_ih_ref[...], b_hh_ref[...])              # (B, H)

        logits = (jnp.dot(h_new, wout_ref[...],
                          preferred_element_type=jnp.float32) + bout_ref[...])
        out_ref[0] = logits                      # lane-dense (B, Vp) store

        # Greedy token = first index reaching the max (torch.argmax tie-break).
        # Padded lanes carry NEG_BIG bias so they never reach the max.
        lane_iota = jax.lax.broadcasted_iota(jnp.int32, (B, Vp), 1)
        m = jnp.max(logits, axis=1, keepdims=True)
        greedy = jnp.min(jnp.where(logits == m, lane_iota, Vp),
                         axis=1, keepdims=True)                      # (B, 1)

        tf = tf_ref[t]                           # 0/1 int32 from SMEM
        tok_scr[...] = jnp.where(tf > 0, tgt_ref[0], greedy)
        h_scr[...] = h_new


# ---------------------------------------------------------------------------
# Wrappers
# ---------------------------------------------------------------------------

def _encoder_chunk(S, max_chunk=8):
    for c in range(min(S, max_chunk), 0, -1):
        if S % c == 0:
            return c
    return 1


def encoder_forward(src_emb, enc):
    """src_emb: (S, B, E) f32 -> final hidden (B, H) f32."""
    S, B, E = src_emb.shape
    H = enc["whh"].shape[0]
    chunk = _encoder_chunk(S)
    return pl.pallas_call(
        encoder_kernel,
        out_shape=jax.ShapeDtypeStruct((B, H), jnp.float32),
        grid=(S // chunk,),
        in_specs=[
            pl.BlockSpec((chunk, B, E), lambda s: (s, 0, 0)),
            pl.BlockSpec((E, 3 * H), lambda s: (0, 0)),
            pl.BlockSpec((H, 3 * H), lambda s: (0, 0)),
            pl.BlockSpec((1, 3 * H), lambda s: (0, 0)),
            pl.BlockSpec((1, 3 * H), lambda s: (0, 0)),
        ],
        out_specs=pl.BlockSpec((B, H), lambda s: (0, 0)),
        compiler_params=pltpu.CompilerParams(
            dimension_semantics=("arbitrary",),
            vmem_limit_bytes=32 * 1024 * 1024),
    )(src_emb, enc["wih"], enc["whh"], enc["bih"], enc["bhh"])


def decoder_forward(tf_flags, tgt_r, hidden, dec):
    """Streamed decoder loop.  Returns padded logits (T, B, Vpad) f32."""
    T, B, _ = tgt_r.shape
    V, E = dec["emb"].shape
    H = hidden.shape[1]
    Vp = dec["wout_pad"].shape[1]

    grid_spec = pltpu.PrefetchScalarGridSpec(
        num_scalar_prefetch=1,
        grid=(T,),
        in_specs=[
            pl.BlockSpec((1, B, 1), lambda t, tf: (t, 0, 0)),   # target[t] tokens
            pl.BlockSpec((B, H), lambda t, tf: (0, 0)),         # encoder hidden
            pl.BlockSpec((V, E), lambda t, tf: (0, 0)),         # dec embedding
            pl.BlockSpec((E, 3 * H), lambda t, tf: (0, 0)),     # W_ih
            pl.BlockSpec((H, 3 * H), lambda t, tf: (0, 0)),     # W_hh
            pl.BlockSpec((1, 3 * H), lambda t, tf: (0, 0)),     # b_ih
            pl.BlockSpec((1, 3 * H), lambda t, tf: (0, 0)),     # b_hh
            pl.BlockSpec((H, Vp), lambda t, tf: (0, 0)),        # W_out (padded)
            pl.BlockSpec((1, Vp), lambda t, tf: (0, 0)),        # b_out (padded)
        ],
        out_specs=pl.BlockSpec((1, B, Vp), lambda t, tf: (t, 0, 0)),
        scratch_shapes=[pltpu.VMEM((B, H), jnp.float32),        # hidden carry
                        pltpu.VMEM((B, 1), jnp.int32)],         # next-token carry
    )
    return pl.pallas_call(
        decoder_kernel,
        out_shape=jax.ShapeDtypeStruct((T, B, Vp), jnp.float32),
        grid_spec=grid_spec,
        compiler_params=pltpu.CompilerParams(
            dimension_semantics=("arbitrary",),
            vmem_limit_bytes=32 * 1024 * 1024),
    )(tf_flags, tgt_r, hidden, dec["emb"],
      dec["wih"], dec["whh"], dec["bih"], dec["bhh"],
      dec["wout_pad"], dec["bout_pad"])


@jax.jit
def seq2seq_forward(source, target, kparams, tf_key, teacher_forcing_ratio=0.5):
    """source: (S, B) int32, target: (T, B) int32 -> (T, B, V) f32."""
    enc, dec = kparams["enc"], kparams["dec"]
    T, B = target.shape
    V = dec["emb"].shape[0]

    # Encoder: embedding lookup is glue; the recurrence is one Pallas kernel.
    src_emb = jnp.take(enc["emb"], source, axis=0)                 # (S, B, E)
    hidden = encoder_forward(src_emb, enc)                         # (B, H)

    # Deterministic replacement for python random.random() per-step coin flips.
    tf_flags = (jax.random.uniform(tf_key, (T,))
                < teacher_forcing_ratio).astype(jnp.int32)
    tgt_r = target.reshape(T, B, 1).astype(jnp.int32)

    logits_pad = decoder_forward(tf_flags, tgt_r, hidden, dec)     # (T, B, Vp)
    return logits_pad[:, :, :V]


# ---------------------------------------------------------------------------
# Parameters (PyTorch-equivalent shapes; weights pre-transposed to x @ W form)
# ---------------------------------------------------------------------------

def init_params(key, src_vocab, trg_vocab, emb_dim, hid_dim):
    ks = jax.random.split(key, 12)
    s = 0.1

    def nrm(k, shape):
        return (s * jax.random.normal(k, shape)).astype(jnp.float32)

    enc = dict(
        emb=nrm(ks[0], (src_vocab, emb_dim)),
        wih=nrm(ks[1], (emb_dim, 3 * hid_dim)),     # transposed weight_ih_l0 [r|z|n]
        whh=nrm(ks[2], (hid_dim, 3 * hid_dim)),     # transposed weight_hh_l0
        bih=nrm(ks[3], (1, 3 * hid_dim)),
        bhh=nrm(ks[4], (1, 3 * hid_dim)),
    )
    dec = dict(
        emb=nrm(ks[5], (trg_vocab, emb_dim)),
        wih=nrm(ks[6], (emb_dim, 3 * hid_dim)),
        whh=nrm(ks[7], (hid_dim, 3 * hid_dim)),
        bih=nrm(ks[8], (1, 3 * hid_dim)),
        bhh=nrm(ks[9], (1, 3 * hid_dim)),
        wout=nrm(ks[10], (hid_dim, trg_vocab)),      # transposed nn.Linear weight
        bout=nrm(ks[11], (1, trg_vocab)),
    )
    return dict(enc=enc, dec=dec)


def prepare_kernel_params(params):
    enc, dec = params["enc"], params["dec"]
    V = dec["wout"].shape[1]
    Vp = ((V + 127) // 128) * 128                    # lane-pad vocab to 128 mult
    kenc = dict(emb=enc["emb"], wih=enc["wih"], whh=enc["whh"],
                bih=enc["bih"], bhh=enc["bhh"])
    kdec = dict(emb=dec["emb"], wih=dec["wih"], whh=dec["whh"],
                bih=dec["bih"], bhh=dec["bhh"],
                wout_pad=jnp.pad(dec["wout"], ((0, 0), (0, Vp - V))),
                bout_pad=jnp.pad(dec["bout"], ((0, 0), (0, Vp - V)),
                                 constant_values=NEG_BIG))
    return dict(enc=kenc, dec=kdec)


# ---------------------------------------------------------------------------
# Pure-JAX reference (PyTorch-style math) for correctness checking
# ---------------------------------------------------------------------------

def _gru_cell_ref(x, h, wih, whh, bih, bhh):
    H = h.shape[-1]
    gx = x @ wih + bih
    gh = h @ whh + bhh
    r = jax.nn.sigmoid(gx[:, :H] + gh[:, :H])
    z = jax.nn.sigmoid(gx[:, H:2 * H] + gh[:, H:2 * H])
    n = jnp.tanh(gx[:, 2 * H:] + r * gh[:, 2 * H:])
    return (1.0 - z) * n + z * h


def seq2seq_reference(source, target, params, tf_key, teacher_forcing_ratio=0.5):
    enc, dec = params["enc"], params["dec"]
    T, B = target.shape
    V = dec["wout"].shape[1]
    H = dec["whh"].shape[0]

    h = jnp.zeros((B, H), jnp.float32)
    for s in range(source.shape[0]):
        x = jnp.take(enc["emb"], source[s], axis=0)
        h = _gru_cell_ref(x, h, enc["wih"], enc["whh"], enc["bih"], enc["bhh"])

    tf_flags = jax.random.uniform(tf_key, (T,)) < teacher_forcing_ratio
    outputs = jnp.zeros((T, B, V), jnp.float32)
    inputs = target[0]
    for t in range(1, T):
        x = jnp.take(dec["emb"], inputs, axis=0)
        h = _gru_cell_ref(x, h, dec["wih"], dec["whh"], dec["bih"], dec["bhh"])
        logits = h @ dec["wout"] + dec["bout"]
        outputs = outputs.at[t].set(logits)
        greedy = jnp.argmax(logits, axis=1).astype(inputs.dtype)
        inputs = jnp.where(tf_flags[t], target[t], greedy)
    return outputs


# ---------------------------------------------------------------------------

if __name__ == "__main__":
    SRC_VOCAB, TRG_VOCAB = 64, 64
    EMB, HID = 32, 32            # enc_emb_dim = dec_emb_dim, enc_hid = dec_hid
    SRC_LEN, TRG_LEN, BATCH = 16, 6, 8   # SRC_LEN=16 -> 2 encoder grid chunks

    root = jax.random.PRNGKey(0)
    k_param, k_src, k_trg, k_tf = jax.random.split(root, 4)

    params = init_params(k_param, SRC_VOCAB, TRG_VOCAB, EMB, HID)
    kparams = prepare_kernel_params(params)

    source = jax.random.randint(k_src, (SRC_LEN, BATCH), 0, SRC_VOCAB,
                                dtype=jnp.int32)
    target = jax.random.randint(k_trg, (TRG_LEN, BATCH), 0, TRG_VOCAB,
                                dtype=jnp.int32)

    # Main run (mixed teacher forcing, same semantics as the PyTorch module).
    outputs = seq2seq_forward(source, target, kparams, k_tf, 0.5)
    outputs = jax.block_until_ready(outputs)

    assert outputs.shape == (TRG_LEN, BATCH, TRG_VOCAB)
    assert bool(jnp.all(outputs[0] == 0.0))          # outputs[0] stays zero
    assert bool(jnp.all(jnp.isfinite(outputs)))

    # Numerical cross-check vs. pure-JAX reference with teacher forcing always on
    # (token stream independent of argmax ties -> deterministic comparison).
    out_k = seq2seq_forward(source, target, kparams, k_tf, 1.0)
    out_r = seq2seq_reference(source, target, params, k_tf, 1.0)
    assert bool(jnp.allclose(out_k, out_r, atol=2e-4, rtol=2e-4)), \
        float(jnp.max(jnp.abs(out_k - out_r)))

    print("KERNEL_OK")
</pallas_src>

<mosaic_0001>
module attributes {stable_mosaic.version = 11 : i64} {
  func.func @decoder_kernel(%arg0: i32, %arg1: memref<6xi32, #tpu.memory_space<smem>>, %arg2: memref<1x8x1xi32, #tpu.memory_space<vmem>>, %arg3: memref<8x32xf32, #tpu.memory_space<vmem>>, %arg4: memref<64x32xf32, #tpu.memory_space<vmem>>, %arg5: memref<32x96xf32, #tpu.memory_space<vmem>>, %arg6: memref<32x96xf32, #tpu.memory_space<vmem>>, %arg7: memref<1x96xf32, #tpu.memory_space<vmem>>, %arg8: memref<1x96xf32, #tpu.memory_space<vmem>>, %arg9: memref<32x128xf32, #tpu.memory_space<vmem>>, %arg10: memref<1x128xf32, #tpu.memory_space<vmem>>, %arg11: memref<1x8x128xf32, #tpu.memory_space<vmem>>, %arg12: memref<8x32xf32, #tpu.memory_space<vmem>>, %arg13: memref<8x1xi32, #tpu.memory_space<vmem>>) attributes {dimension_semantics = [#tpu.dimension_semantics<arbitrary>], iteration_bounds = array<i64: 6>, scalar_prefetch = 1 : i64, scratch_operands = 2 : i64, tpu.core_type = #tpu.core_type<tc>, window_params = [{transform_indices = @transform_0, window_bounds = array<i64: 1, 8, 1>}, {pipeline_mode = #tpu.pipeline_mode<synchronous>, transform_indices = @transform_1, window_bounds = array<i64: 8, 32>}, {pipeline_mode = #tpu.pipeline_mode<synchronous>, transform_indices = @transform_2, window_bounds = array<i64: 64, 32>}, {pipeline_mode = #tpu.pipeline_mode<synchronous>, transform_indices = @transform_3, window_bounds = array<i64: 32, 96>}, {pipeline_mode = #tpu.pipeline_mode<synchronous>, transform_indices = @transform_4, window_bounds = array<i64: 32, 96>}, {pipeline_mode = #tpu.pipeline_mode<synchronous>, transform_indices = @transform_5, window_bounds = array<i64: 1, 96>}, {pipeline_mode = #tpu.pipeline_mode<synchronous>, transform_indices = @transform_6, window_bounds = array<i64: 1, 96>}, {pipeline_mode = #tpu.pipeline_mode<synchronous>, transform_indices = @transform_7, window_bounds = array<i64: 32, 128>}, {pipeline_mode = #tpu.pipeline_mode<synchronous>, transform_indices = @transform_8, window_bounds = array<i64: 1, 128>}, {transform_indices = @transform_9, window_bounds = array<i64: 1, 8, 128>}]} {
    %c0_i32 = arith.constant 0 : i32
    %0 = arith.cmpi eq, %arg0, %c0_i32 : i32
    %1 = arith.extui %0 : i1 to i32
    %c0_i32_0 = arith.constant 0 : i32
    %2 = arith.cmpi ne, %1, %c0_i32_0 : i32
    scf.if %2 {
      %cst = arith.constant 0.000000e+00 : f32
      %6 = vector.broadcast %cst : f32 to vector<1x8x128xf32>
      %c0 = arith.constant 0 : index
      %c0_3 = arith.constant 0 : index
      %c0_4 = arith.constant 0 : index
      %7 = vector.load %arg11[%c0, %c0_3, %c0_4] : memref<1x8x128xf32, #tpu.memory_space<vmem>>, vector<1x8x128xf32>
      tpu.vector_store %arg11[%c0, %c0_3, %c0_4], %6 {strides = array<i32>} : memref<1x8x128xf32, #tpu.memory_space<vmem>>, vector<1x8x128xf32>,
      %c0_5 = arith.constant 0 : index
      %c0_6 = arith.constant 0 : index
      %8 = vector.load %arg3[%c0_5, %c0_6] : memref<8x32xf32, #tpu.memory_space<vmem>>, vector<8x32xf32>
      %c0_7 = arith.constant 0 : index
      %c0_8 = arith.constant 0 : index
      %9 = vector.load %arg12[%c0_7, %c0_8] : memref<8x32xf32, #tpu.memory_space<vmem>>, vector<8x32xf32>
      tpu.vector_store %arg12[%c0_7, %c0_8], %8 {strides = array<i32>} : memref<8x32xf32, #tpu.memory_space<vmem>>, vector<8x32xf32>,
      %c0_9 = arith.constant 0 : index
      %c0_10 = arith.constant 0 : index
      %c0_11 = arith.constant 0 : index
      %10 = vector.load %arg2[%c0_9, %c0_10, %c0_11] : memref<1x8x1xi32, #tpu.memory_space<vmem>>, vector<1x8x1xi32>
      %11 = vector.shape_cast %10 : vector<1x8x1xi32> to vector<8x1xi32>
      %c0_12 = arith.constant 0 : index
      %c0_13 = arith.constant 0 : index
      %12 = vector.load %arg13[%c0_12, %c0_13] : memref<8x1xi32, #tpu.memory_space<vmem>>, vector<8x1xi32>
      tpu.vector_store %arg13[%c0_12, %c0_13], %11 {strides = array<i32>} : memref<8x1xi32, #tpu.memory_space<vmem>>, vector<8x1xi32>,
    } else {
    }
    %c0_i32_1 = arith.constant 0 : i32
    %3 = arith.cmpi sgt, %arg0, %c0_i32_1 : i32
    %4 = arith.extui %3 : i1 to i32
    %c0_i32_2 = arith.constant 0 : i32
    %5 = arith.cmpi ne, %4, %c0_i32_2 : i32
    scf.if %5 {
      %c0 = arith.constant 0 : index
      %c0_3 = arith.constant 0 : index
      %6 = vector.load %arg12[%c0, %c0_3] : memref<8x32xf32, #tpu.memory_space<vmem>>, vector<8x32xf32>
      %c0_4 = arith.constant 0 : index
      %c0_5 = arith.constant 0 : index
      %7 = vector.load %arg13[%c0_4, %c0_5] : memref<8x1xi32, #tpu.memory_space<vmem>>, vector<8x1xi32>
      %8 = tpu.iota {dimensions = array<i32: 1>} : vector<8x64xi32>
      %9 = vector.broadcast %7 : vector<8x1xi32> to vector<8x64xi32>
      %10 = arith.cmpi eq, %8, %9 : vector<8x64xi32>
      %11 = arith.extui %10 : vector<8x64xi1> to vector<8x64xi32>
      %12 = arith.sitofp %11 : vector<8x64xi32> to vector<8x64xf32>
      %c0_6 = arith.constant 0 : index
      %c0_7 = arith.constant 0 : index
      %13 = vector.load %arg4[%c0_6, %c0_7] : memref<64x32xf32, #tpu.memory_space<vmem>>, vector<64x32xf32>
      %cst = arith.constant dense<0.000000e+00> : vector<8x32xf32>
      %14 = tpu.matmul %12, %13, %cst {dimension_numbers = #tpu.dot_dimension_numbers<[1], [0], [0], [1], [0, 0, 1, 1], [], []>} : vector<8x64xf32>, vector<64x32xf32>, vector<8x32xf32> -> vector<8x32xf32>
      %c0_8 = arith.constant 0 : index
      %c0_9 = arith.constant 0 : index
      %15 = vector.load %arg5[%c0_8, %c0_9] : memref<32x96xf32, #tpu.memory_space<vmem>>, vector<32x96xf32>
      %c0_10 = arith.constant 0 : index
      %c0_11 = arith.constant 0 : index
      %16 = vector.load %arg6[%c0_10, %c0_11] : memref<32x96xf32, #tpu.memory_space<vmem>>, vector<32x96xf32>
      %c0_12 = arith.constant 0 : index
      %c0_13 = arith.constant 0 : index
      %17 = vector.load %arg7[%c0_12, %c0_13] : memref<1x96xf32, #tpu.memory_space<vmem>>, vector<1x96xf32>
      %c0_14 = arith.constant 0 : index
      %c0_15 = arith.constant 0 : index
      %18 = vector.load %arg8[%c0_14, %c0_15] : memref<1x96xf32, #tpu.memory_space<vmem>>, vector<1x96xf32>
      %cst_16 = arith.constant dense<0.000000e+00> : vector<8x96xf32>
      %19 = tpu.matmul %14, %15, %cst_16 {dimension_numbers = #tpu.dot_dimension_numbers<[1], [0], [0], [1], [0, 0, 1, 1], [], []>} : vector<8x32xf32>, vector<32x96xf32>, vector<8x96xf32> -> vector<8x96xf32>
      %20 = vector.broadcast %17 : vector<1x96xf32> to vector<8x96xf32>
      %21 = arith.addf %19, %20 : vector<8x96xf32>
      %cst_17 = arith.constant dense<0.000000e+00> : vector<8x96xf32>
      %22 = tpu.matmul %6, %16, %cst_17 {dimension_numbers = #tpu.dot_dimension_numbers<[1], [0], [0], [1], [0, 0, 1, 1], [], []>} : vector<8x32xf32>, vector<32x96xf32>, vector<8x96xf32> -> vector<8x96xf32>
      %23 = vector.broadcast %18 : vector<1x96xf32> to vector<8x96xf32>
      %24 = arith.addf %22, %23 : vector<8x96xf32>
      %25 = vector.extract_strided_slice %21 {offsets = [0, 0], sizes = [8, 32], strides = [1, 1]} : vector<8x96xf32> to vector<8x32xf32>
      %26 = vector.extract_strided_slice %24 {offsets = [0, 0], sizes = [8, 32], strides = [1, 1]} : vector<8x96xf32> to vector<8x32xf32>
      %27 = arith.addf %25, %26 : vector<8x32xf32>
      %28 = arith.negf %27 : vector<8x32xf32>
      %29 = math.exp %28 : vector<8x32xf32>
      %cst_18 = arith.constant 1.000000e+00 : f32
      %30 = vector.broadcast %cst_18 : f32 to vector<8x32xf32>
      %31 = arith.addf %30, %29 : vector<8x32xf32>
      %32 = arith.divf %30, %31 : vector<8x32xf32>
      %33 = vector.extract_strided_slice %21 {offsets = [0, 32], sizes = [8, 32], strides = [1, 1]} : vector<8x96xf32> to vector<8x32xf32>
      %34 = vector.extract_strided_slice %24 {offsets = [0, 32], sizes = [8, 32], strides = [1, 1]} : vector<8x96xf32> to vector<8x32xf32>
      %35 = arith.addf %33, %34 : vector<8x32xf32>
      %36 = arith.negf %35 : vector<8x32xf32>
      %37 = math.exp %36 : vector<8x32xf32>
      %cst_19 = arith.constant 1.000000e+00 : f32
      %38 = vector.broadcast %cst_19 : f32 to vector<8x32xf32>
      %39 = arith.addf %38, %37 : vector<8x32xf32>
      %40 = arith.divf %38, %39 : vector<8x32xf32>
      %41 = vector.extract_strided_slice %21 {offsets = [0, 64], sizes = [8, 32], strides = [1, 1]} : vector<8x96xf32> to vector<8x32xf32>
      %42 = vector.extract_strided_slice %24 {offsets = [0, 64], sizes = [8, 32], strides = [1, 1]} : vector<8x96xf32> to vector<8x32xf32>
      %43 = arith.mulf %32, %42 : vector<8x32xf32>
      %44 = arith.addf %41, %43 : vector<8x32xf32>
      %45 = math.tanh %44 : vector<8x32xf32>
      %cst_20 = arith.constant 1.000000e+00 : f32
      %46 = vector.broadcast %cst_20 : f32 to vector<8x32xf32>
      %47 = arith.subf %46, %40 : vector<8x32xf32>
      %48 = arith.mulf %47, %45 : vector<8x32xf32>
      %49 = arith.mulf %40, %6 : vector<8x32xf32>
      %50 = arith.addf %48, %49 : vector<8x32xf32>
      %c0_21 = arith.constant 0 : index
      %c0_22 = arith.constant 0 : index
      %51 = vector.load %arg9[%c0_21, %c0_22] : memref<32x128xf32, #tpu.memory_space<vmem>>, vector<32x128xf32>
      %cst_23 = arith.constant dense<0.000000e+00> : vector<8x128xf32>
      %52 = tpu.matmul %50, %51, %cst_23 {dimension_numbers = #tpu.dot_dimension_numbers<[1], [0], [0], [1], [0, 0, 1, 1], [], []>} : vector<8x32xf32>, vector<32x128xf32>, vector<8x128xf32> -> vector<8x128xf32>
      %c0_24 = arith.constant 0 : index
      %c0_25 = arith.constant 0 : index
      %53 = vector.load %arg10[%c0_24, %c0_25] : memref<1x128xf32, #tpu.memory_space<vmem>>, vector<1x128xf32>
      %54 = vector.broadcast %53 : vector<1x128xf32> to vector<8x128xf32>
      %55 = arith.addf %52, %54 : vector<8x128xf32>
      %c0_26 = arith.constant 0 : index
      %c0_27 = arith.constant 0 : index
      %c0_28 = arith.constant 0 : index
      %56 = vector.load %arg11[%c0_26, %c0_27, %c0_28] : memref<1x8x128xf32, #tpu.memory_space<vmem>>, vector<1x8x128xf32>
      %57 = vector.shape_cast %56 : vector<1x8x128xf32> to vector<8x128xf32>
      %58 = vector.shape_cast %55 : vector<8x128xf32> to vector<1x8x128xf32>
      tpu.vector_store %arg11[%c0_26, %c0_27, %c0_28], %58 {strides = array<i32>} : memref<1x8x128xf32, #tpu.memory_space<vmem>>, vector<1x8x128xf32>,
      %59 = tpu.iota {dimensions = array<i32: 1>} : vector<8x128xi32>
      %cst_29 = arith.constant dense<0xFF800000> : vector<8xf32>
      %60 = vector.multi_reduction <maximumf>, %55, %cst_29 [1] : vector<8x128xf32> to vector<8xf32>
      %61 = vector.shape_cast %60 : vector<8xf32> to vector<8x1xf32>
      %62 = vector.broadcast %61 : vector<8x1xf32> to vector<8x128xf32>
      %63 = arith.cmpf oeq, %55, %62 : vector<8x128xf32>
      %c128_i32 = arith.constant 128 : i32
      %64 = vector.broadcast %c128_i32 : i32 to vector<8x128xi32>
      %65 = arith.select %63, %59, %64 : vector<8x128xi1>, vector<8x128xi32>
      %cst_30 = arith.constant dense<2147483647> : vector<8xi32>
      %66 = vector.multi_reduction <minsi>, %65, %cst_30 [1] : vector<8x128xi32> to vector<8xi32>
      %67 = vector.shape_cast %66 : vector<8xi32> to vector<8x1xi32>
      %68 = arith.index_cast %arg0 : i32 to index
      %69 = memref.load %arg1[%68] : memref<6xi32, #tpu.memory_space<smem>>
      %c0_i32_31 = arith.constant 0 : i32
      %70 = arith.cmpi sgt, %69, %c0_i32_31 : i32
      %c0_32 = arith.constant 0 : index
      %c0_33 = arith.constant 0 : index
      %c0_34 = arith.constant 0 : index
      %71 = vector.load %arg2[%c0_32, %c0_33, %c0_34] : memref<1x8x1xi32, #tpu.memory_space<vmem>>, vector<1x8x1xi32>
      %72 = vector.shape_cast %71 : vector<1x8x1xi32> to vector<8x1xi32>
      %73 = arith.select %70, %72, %67 : vector<8x1xi32>
      %c0_35 = arith.constant 0 : index
      %c0_36 = arith.constant 0 : index
      %74 = vector.load %arg13[%c0_35, %c0_36] : memref<8x1xi32, #tpu.memory_space<vmem>>, vector<8x1xi32>
      tpu.vector_store %arg13[%c0_35, %c0_36], %73 {strides = array<i32>} : memref<8x1xi32, #tpu.memory_space<vmem>>, vector<8x1xi32>,
      %c0_37 = arith.constant 0 : index
      %c0_38 = arith.constant 0 : index
      %75 = vector.load %arg12[%c0_37, %c0_38] : memref<8x32xf32, #tpu.memory_space<vmem>>, vector<8x32xf32>
      tpu.vector_store %arg12[%c0_37, %c0_38], %50 {strides = array<i32>} : memref<8x32xf32, #tpu.memory_space<vmem>>, vector<8x32xf32>,
    } else {
    }
    return
  }
  func.func @transform_0(%arg0: i32, %arg1: memref<6xi32, #tpu.memory_space<smem>>) -> (i32, i32, i32) {
    %c0_i32 = arith.constant 0 : i32
    %c0_i32_0 = arith.constant 0 : i32
    %c0_i32_1 = arith.constant 0 : i32
    return %arg0, %c0_i32, %c0_i32_0 : i32, i32, i32
  }
  func.func @transform_1(%arg0: i32, %arg1: memref<6xi32, #tpu.memory_space<smem>>) -> (i32, i32) {
    %c0_i32 = arith.constant 0 : i32
    %c0_i32_0 = arith.constant 0 : i32
    %c0_i32_1 = arith.constant 0 : i32
    return %c0_i32, %c0_i32_0 : i32, i32
  }
  func.func @transform_2(%arg0: i32, %arg1: memref<6xi32, #tpu.memory_space<smem>>) -> (i32, i32) {
    %c0_i32 = arith.constant 0 : i32
    %c0_i32_0 = arith.constant 0 : i32
    %c0_i32_1 = arith.constant 0 : i32
    return %c0_i32, %c0_i32_0 : i32, i32
  }
  func.func @transform_3(%arg0: i32, %arg1: memref<6xi32, #tpu.memory_space<smem>>) -> (i32, i32) {
    %c0_i32 = arith.constant 0 : i32
    %c0_i32_0 = arith.constant 0 : i32
    %c0_i32_1 = arith.constant 0 : i32
    return %c0_i32, %c0_i32_0 : i32, i32
  }
  func.func @transform_4(%arg0: i32, %arg1: memref<6xi32, #tpu.memory_space<smem>>) -> (i32, i32) {
    %c0_i32 = arith.constant 0 : i32
    %c0_i32_0 = arith.constant 0 : i32
    %c0_i32_1 = arith.constant 0 : i32
    return %c0_i32, %c0_i32_0 : i32, i32
  }
  func.func @transform_5(%arg0: i32, %arg1: memref<6xi32, #tpu.memory_space<smem>>) -> (i32, i32) {
    %c0_i32 = arith.constant 0 : i32
    %c0_i32_0 = arith.constant 0 : i32
    %c0_i32_1 = arith.constant 0 : i32
    return %c0_i32, %c0_i32_0 : i32, i32
  }
  func.func @transform_6(%arg0: i32, %arg1: memref<6xi32, #tpu.memory_space<smem>>) -> (i32, i32) {
    %c0_i32 = arith.constant 0 : i32
    %c0_i32_0 = arith.constant 0 : i32
    %c0_i32_1 = arith.constant 0 : i32
    return %c0_i32, %c0_i32_0 : i32, i32
  }
  func.func @transform_7(%arg0: i32, %arg1: memref<6xi32, #tpu.memory_space<smem>>) -> (i32, i32) {
    %c0_i32 = arith.constant 0 : i32
    %c0_i32_0 = arith.constant 0 : i32
    %c0_i32_1 = arith.constant 0 : i32
    return %c0_i32, %c0_i32_0 : i32, i32
  }
  func.func @transform_8(%arg0: i32, %arg1: memref<6xi32, #tpu.memory_space<smem>>) -> (i32, i32) {
    %c0_i32 = arith.constant 0 : i32
    %c0_i32_0 = arith.constant 0 : i32
    %c0_i32_1 = arith.constant 0 : i32
    return %c0_i32, %c0_i32_0 : i32, i32
  }
  func.func @transform_9(%arg0: i32, %arg1: memref<6xi32, #tpu.memory_space<smem>>) -> (i32, i32, i32) {
    %c0_i32 = arith.constant 0 : i32
    %c0_i32_0 = arith.constant 0 : i32
    %c0_i32_1 = arith.constant 0 : i32
    return %arg0, %c0_i32, %c0_i32_0 : i32, i32, i32
  }
}

module attributes {stable_mosaic.version = 11 : i64} {
  func.func @encoder_kernel(%arg0: i32, %arg1: memref<8x8x32xf32, #tpu.memory_space<vmem>>, %arg2: memref<32x96xf32, #tpu.memory_space<vmem>>, %arg3: memref<32x96xf32, #tpu.memory_space<vmem>>, %arg4: memref<1x96xf32, #tpu.memory_space<vmem>>, %arg5: memref<1x96xf32, #tpu.memory_space<vmem>>, %arg6: memref<8x32xf32, #tpu.memory_space<vmem>>) attributes {dimension_semantics = [#tpu.dimension_semantics<arbitrary>], iteration_bounds = array<i64: 2>, scalar_prefetch = 0 : i64, scratch_operands = 0 : i64, tpu.core_type = #tpu.core_type<tc>, window_params = [{transform_indices = @transform_0, window_bounds = array<i64: 8, 8, 32>}, {pipeline_mode = #tpu.pipeline_mode<synchronous>, transform_indices = @transform_1, window_bounds = array<i64: 32, 96>}, {pipeline_mode = #tpu.pipeline_mode<synchronous>, transform_indices = @transform_2, window_bounds = array<i64: 32, 96>}, {pipeline_mode = #tpu.pipeline_mode<synchronous>, transform_indices = @transform_3, window_bounds = array<i64: 1, 96>}, {pipeline_mode = #tpu.pipeline_mode<synchronous>, transform_indices = @transform_4, window_bounds = array<i64: 1, 96>}, {pipeline_mode = #tpu.pipeline_mode<synchronous>, transform_indices = @transform_5, window_bounds = array<i64: 8, 32>}]} {
    %c0_i32 = arith.constant 0 : i32
    %0 = arith.cmpi eq, %arg0, %c0_i32 : i32
    %1 = arith.extui %0 : i1 to i32
    %c0_i32_0 = arith.constant 0 : i32
    %2 = arith.cmpi ne, %1, %c0_i32_0 : i32
    scf.if %2 {
      %cst_68 = arith.constant 0.000000e+00 : f32
      %289 = vector.broadcast %cst_68 : f32 to vector<8x32xf32>
      %c0_69 = arith.constant 0 : index
      %c0_70 = arith.constant 0 : index
      %290 = vector.load %arg6[%c0_69, %c0_70] : memref<8x32xf32, #tpu.memory_space<vmem>>, vector<8x32xf32>
      tpu.vector_store %arg6[%c0_69, %c0_70], %289 {strides = array<i32>} : memref<8x32xf32, #tpu.memory_space<vmem>>, vector<8x32xf32>,
    } else {
    }
    %c0 = arith.constant 0 : index
    %c0_1 = arith.constant 0 : index
    %3 = vector.load %arg2[%c0, %c0_1] : memref<32x96xf32, #tpu.memory_space<vmem>>, vector<32x96xf32>
    %c0_2 = arith.constant 0 : index
    %c0_3 = arith.constant 0 : index
    %4 = vector.load %arg3[%c0_2, %c0_3] : memref<32x96xf32, #tpu.memory_space<vmem>>, vector<32x96xf32>
    %c0_4 = arith.constant 0 : index
    %c0_5 = arith.constant 0 : index
    %5 = vector.load %arg4[%c0_4, %c0_5] : memref<1x96xf32, #tpu.memory_space<vmem>>, vector<1x96xf32>
    %c0_6 = arith.constant 0 : index
    %c0_7 = arith.constant 0 : index
    %6 = vector.load %arg5[%c0_6, %c0_7] : memref<1x96xf32, #tpu.memory_space<vmem>>, vector<1x96xf32>
    %c0_8 = arith.constant 0 : index
    %c0_9 = arith.constant 0 : index
    %7 = vector.load %arg6[%c0_8, %c0_9] : memref<8x32xf32, #tpu.memory_space<vmem>>, vector<8x32xf32>
    %c0_i32_10 = arith.constant 0 : i32
    %8 = arith.index_cast %c0_i32_10 : i32 to index
    %c0_11 = arith.constant 0 : index
    %c0_12 = arith.constant 0 : index
    %9 = vector.load %arg1[%8, %c0_11, %c0_12] : memref<8x8x32xf32, #tpu.memory_space<vmem>>, vector<1x8x32xf32>
    %10 = vector.shape_cast %9 : vector<1x8x32xf32> to vector<8x32xf32>
    %cst = arith.constant dense<0.000000e+00> : vector<8x96xf32>
    %11 = tpu.matmul %10, %3, %cst {dimension_numbers = #tpu.dot_dimension_numbers<[1], [0], [0], [1], [0, 0, 1, 1], [], []>} : vector<8x32xf32>, vector<32x96xf32>, vector<8x96xf32> -> vector<8x96xf32>
    %12 = vector.broadcast %5 : vector<1x96xf32> to vector<8x96xf32>
    %13 = arith.addf %11, %12 : vector<8x96xf32>
    %cst_13 = arith.constant dense<0.000000e+00> : vector<8x96xf32>
    %14 = tpu.matmul %7, %4, %cst_13 {dimension_numbers = #tpu.dot_dimension_numbers<[1], [0], [0], [1], [0, 0, 1, 1], [], []>} : vector<8x32xf32>, vector<32x96xf32>, vector<8x96xf32> -> vector<8x96xf32>
    %15 = vector.broadcast %6 : vector<1x96xf32> to vector<8x96xf32>
    %16 = arith.addf %14, %15 : vector<8x96xf32>
    %17 = vector.extract_strided_slice %13 {offsets = [0, 0], sizes = [8, 32], strides = [1, 1]} : vector<8x96xf32> to vector<8x32xf32>
    %18 = vector.extract_strided_slice %16 {offsets = [0, 0], sizes = [8, 32], strides = [1, 1]} : vector<8x96xf32> to vector<8x32xf32>
    %19 = arith.addf %17, %18 : vector<8x32xf32>
    %20 = arith.negf %19 : vector<8x32xf32>
    %21 = math.exp %20 : vector<8x32xf32>
    %cst_14 = arith.constant 1.000000e+00 : f32
    %22 = vector.broadcast %cst_14 : f32 to vector<8x32xf32>
    %23 = arith.addf %22, %21 : vector<8x32xf32>
    %24 = arith.divf %22, %23 : vector<8x32xf32>
    %25 = vector.extract_strided_slice %13 {offsets = [0, 32], sizes = [8, 32], strides = [1, 1]} : vector<8x96xf32> to vector<8x32xf32>
    %26 = vector.extract_strided_slice %16 {offsets = [0, 32], sizes = [8, 32], strides = [1, 1]} : vector<8x96xf32> to vector<8x32xf32>
    %27 = arith.addf %25, %26 : vector<8x32xf32>
    %28 = arith.negf %27 : vector<8x32xf32>
    %29 = math.exp %28 : vector<8x32xf32>
    %cst_15 = arith.constant 1.000000e+00 : f32
    %30 = vector.broadcast %cst_15 : f32 to vector<8x32xf32>
    %31 = arith.addf %30, %29 : vector<8x32xf32>
    %32 = arith.divf %30, %31 : vector<8x32xf32>
    %33 = vector.extract_strided_slice %13 {offsets = [0, 64], sizes = [8, 32], strides = [1, 1]} : vector<8x96xf32> to vector<8x32xf32>
    %34 = vector.extract_strided_slice %16 {offsets = [0, 64], sizes = [8, 32], strides = [1, 1]} : vector<8x96xf32> to vector<8x32xf32>
    %35 = arith.mulf %24, %34 : vector<8x32xf32>
    %36 = arith.addf %33, %35 : vector<8x32xf32>
    %37 = math.tanh %36 : vector<8x32xf32>
    %cst_16 = arith.constant 1.000000e+00 : f32
    %38 = vector.broadcast %cst_16 : f32 to vector<8x32xf32>
    %39 = arith.subf %38, %32 : vector<8x32xf32>
    %40 = arith.mulf %39, %37 : vector<8x32xf32>
    %41 = arith.mulf %32, %7 : vector<8x32xf32>
    %42 = arith.addf %40, %41 : vector<8x32xf32>
    %c1_i32 = arith.constant 1 : i32
    %43 = arith.index_cast %c1_i32 : i32 to index
    %c0_17 = arith.constant 0 : index
    %c0_18 = arith.constant 0 : index
    %44 = vector.load %arg1[%43, %c0_17, %c0_18] : memref<8x8x32xf32, #tpu.memory_space<vmem>>, vector<1x8x32xf32>
    %45 = vector.shape_cast %44 : vector<1x8x32xf32> to vector<8x32xf32>
    %cst_19 = arith.constant dense<0.000000e+00> : vector<8x96xf32>
    %46 = tpu.matmul %45, %3, %cst_19 {dimension_numbers = #tpu.dot_dimension_numbers<[1], [0], [0], [1], [0, 0, 1, 1], [], []>} : vector<8x32xf32>, vector<32x96xf32>, vector<8x96xf32> -> vector<8x96xf32>
    %47 = vector.broadcast %5 : vector<1x96xf32> to vector<8x96xf32>
    %48 = arith.addf %46, %47 : vector<8x96xf32>
    %cst_20 = arith.constant dense<0.000000e+00> : vector<8x96xf32>
    %49 = tpu.matmul %42, %4, %cst_20 {dimension_numbers = #tpu.dot_dimension_numbers<[1], [0], [0], [1], [0, 0, 1, 1], [], []>} : vector<8x32xf32>, vector<32x96xf32>, vector<8x96xf32> -> vector<8x96xf32>
    %50 = vector.broadcast %6 : vector<1x96xf32> to vector<8x96xf32>
    %51 = arith.addf %49, %50 : vector<8x96xf32>
    %52 = vector.extract_strided_slice %48 {offsets = [0, 0], sizes = [8, 32], strides = [1, 1]} : vector<8x96xf32> to vector<8x32xf32>
    %53 = vector.extract_strided_slice %51 {offsets = [0, 0], sizes = [8, 32], strides = [1, 1]} : vector<8x96xf32> to vector<8x32xf32>
    %54 = arith.addf %52, %53 : vector<8x32xf32>
    %55 = arith.negf %54 : vector<8x32xf32>
    %56 = math.exp %55 : vector<8x32xf32>
    %cst_21 = arith.constant 1.000000e+00 : f32
    %57 = vector.broadcast %cst_21 : f32 to vector<8x32xf32>
    %58 = arith.addf %57, %56 : vector<8x32xf32>
    %59 = arith.divf %57, %58 : vector<8x32xf32>
    %60 = vector.extract_strided_slice %48 {offsets = [0, 32], sizes = [8, 32], strides = [1, 1]} : vector<8x96xf32> to vector<8x32xf32>
    %61 = vector.extract_strided_slice %51 {offsets = [0, 32], sizes = [8, 32], strides = [1, 1]} : vector<8x96xf32> to vector<8x32xf32>
    %62 = arith.addf %60, %61 : vector<8x32xf32>
    %63 = arith.negf %62 : vector<8x32xf32>
    %64 = math.exp %63 : vector<8x32xf32>
    %cst_22 = arith.constant 1.000000e+00 : f32
    %65 = vector.broadcast %cst_22 : f32 to vector<8x32xf32>
    %66 = arith.addf %65, %64 : vector<8x32xf32>
    %67 = arith.divf %65, %66 : vector<8x32xf32>
    %68 = vector.extract_strided_slice %48 {offsets = [0, 64], sizes = [8, 32], strides = [1, 1]} : vector<8x96xf32> to vector<8x32xf32>
    %69 = vector.extract_strided_slice %51 {offsets = [0, 64], sizes = [8, 32], strides = [1, 1]} : vector<8x96xf32> to vector<8x32xf32>
    %70 = arith.mulf %59, %69 : vector<8x32xf32>
    %71 = arith.addf %68, %70 : vector<8x32xf32>
    %72 = math.tanh %71 : vector<8x32xf32>
    %cst_23 = arith.constant 1.000000e+00 : f32
    %73 = vector.broadcast %cst_23 : f32 to vector<8x32xf32>
    %74 = arith.subf %73, %67 : vector<8x32xf32>
    %75 = arith.mulf %74, %72 : vector<8x32xf32>
    %76 = arith.mulf %67, %42 : vector<8x32xf32>
    %77 = arith.addf %75, %76 : vector<8x32xf32>
    %c2_i32 = arith.constant 2 : i32
    %78 = arith.index_cast %c2_i32 : i32 to index
    %c0_24 = arith.constant 0 : index
    %c0_25 = arith.constant 0 : index
    %79 = vector.load %arg1[%78, %c0_24, %c0_25] : memref<8x8x32xf32, #tpu.memory_space<vmem>>, vector<1x8x32xf32>
    %80 = vector.shape_cast %79 : vector<1x8x32xf32> to vector<8x32xf32>
    %cst_26 = arith.constant dense<0.000000e+00> : vector<8x96xf32>
    %81 = tpu.matmul %80, %3, %cst_26 {dimension_numbers = #tpu.dot_dimension_numbers<[1], [0], [0], [1], [0, 0, 1, 1], [], []>} : vector<8x32xf32>, vector<32x96xf32>, vector<8x96xf32> -> vector<8x96xf32>
    %82 = vector.broadcast %5 : vector<1x96xf32> to vector<8x96xf32>
    %83 = arith.addf %81, %82 : vector<8x96xf32>
    %cst_27 = arith.constant dense<0.000000e+00> : vector<8x96xf32>
    %84 = tpu.matmul %77, %4, %cst_27 {dimension_numbers = #tpu.dot_dimension_numbers<[1], [0], [0], [1], [0, 0, 1, 1], [], []>} : vector<8x32xf32>, vector<32x96xf32>, vector<8x96xf32> -> vector<8x96xf32>
    %85 = vector.broadcast %6 : vector<1x96xf32> to vector<8x96xf32>
    %86 = arith.addf %84, %85 : vector<8x96xf32>
    %87 = vector.extract_strided_slice %83 {offsets = [0, 0], sizes = [8, 32], strides = [1, 1]} : vector<8x96xf32> to vector<8x32xf32>
    %88 = vector.extract_strided_slice %86 {offsets = [0, 0], sizes = [8, 32], strides = [1, 1]} : vector<8x96xf32> to vector<8x32xf32>
    %89 = arith.addf %87, %88 : vector<8x32xf32>
    %90 = arith.negf %89 : vector<8x32xf32>
    %91 = math.exp %90 : vector<8x32xf32>
    %cst_28 = arith.constant 1.000000e+00 : f32
    %92 = vector.broadcast %cst_28 : f32 to vector<8x32xf32>
    %93 = arith.addf %92, %91 : vector<8x32xf32>
    %94 = arith.divf %92, %93 : vector<8x32xf32>
    %95 = vector.extract_strided_slice %83 {offsets = [0, 32], sizes = [8, 32], strides = [1, 1]} : vector<8x96xf32> to vector<8x32xf32>
    %96 = vector.extract_strided_slice %86 {offsets = [0, 32], sizes = [8, 32], strides = [1, 1]} : vector<8x96xf32> to vector<8x32xf32>
    %97 = arith.addf %95, %96 : vector<8x32xf32>
    %98 = arith.negf %97 : vector<8x32xf32>
    %99 = math.exp %98 : vector<8x32xf32>
    %cst_29 = arith.constant 1.000000e+00 : f32
    %100 = vector.broadcast %cst_29 : f32 to vector<8x32xf32>
    %101 = arith.addf %100, %99 : vector<8x32xf32>
    %102 = arith.divf %100, %101 : vector<8x32xf32>
    %103 = vector.extract_strided_slice %83 {offsets = [0, 64], sizes = [8, 32], strides = [1, 1]} : vector<8x96xf32> to vector<8x32xf32>
    %104 = vector.extract_strided_slice %86 {offsets = [0, 64], sizes = [8, 32], strides = [1, 1]} : vector<8x96xf32> to vector<8x32xf32>
    %105 = arith.mulf %94, %104 : vector<8x32xf32>
    %106 = arith.addf %103, %105 : vector<8x32xf32>
    %107 = math.tanh %106 : vector<8x32xf32>
    %cst_30 = arith.constant 1.000000e+00 : f32
    %108 = vector.broadcast %cst_30 : f32 to vector<8x32xf32>
    %109 = arith.subf %108, %102 : vector<8x32xf32>
    %110 = arith.mulf %109, %107 : vector<8x32xf32>
    %111 = arith.mulf %102, %77 : vector<8x32xf32>
    %112 = arith.addf %110, %111 : vector<8x32xf32>
    %c3_i32 = arith.constant 3 : i32
    %113 = arith.index_cast %c3_i32 : i32 to index
    %c0_31 = arith.constant 0 : index
    %c0_32 = arith.constant 0 : index
    %114 = vector.load %arg1[%113, %c0_31, %c0_32] : memref<8x8x32xf32, #tpu.memory_space<vmem>>, vector<1x8x32xf32>
    %115 = vector.shape_cast %114 : vector<1x8x32xf32> to vector<8x32xf32>
    %cst_33 = arith.constant dense<0.000000e+00> : vector<8x96xf32>
    %116 = tpu.matmul %115, %3, %cst_33 {dimension_numbers = #tpu.dot_dimension_numbers<[1], [0], [0], [1], [0, 0, 1, 1], [], []>} : vector<8x32xf32>, vector<32x96xf32>, vector<8x96xf32> -> vector<8x96xf32>
    %117 = vector.broadcast %5 : vector<1x96xf32> to vector<8x96xf32>
    %118 = arith.addf %116, %117 : vector<8x96xf32>
    %cst_34 = arith.constant dense<0.000000e+00> : vector<8x96xf32>
    %119 = tpu.matmul %112, %4, %cst_34 {dimension_numbers = #tpu.dot_dimension_numbers<[1], [0], [0], [1], [0, 0, 1, 1], [], []>} : vector<8x32xf32>, vector<32x96xf32>, vector<8x96xf32> -> vector<8x96xf32>
    %120 = vector.broadcast %6 : vector<1x96xf32> to vector<8x96xf32>
    %121 = arith.addf %119, %120 : vector<8x96xf32>
    %122 = vector.extract_strided_slice %118 {offsets = [0, 0], sizes = [8, 32], strides = [1, 1]} : vector<8x96xf32> to vector<8x32xf32>
    %123 = vector.extract_strided_slice %121 {offsets = [0, 0], sizes = [8, 32], strides = [1, 1]} : vector<8x96xf32> to vector<8x32xf32>
    %124 = arith.addf %122, %123 : vector<8x32xf32>
    %125 = arith.negf %124 : vector<8x32xf32>
    %126 = math.exp %125 : vector<8x32xf32>
    %cst_35 = arith.constant 1.000000e+00 : f32
    %127 = vector.broadcast %cst_35 : f32 to vector<8x32xf32>
    %128 = arith.addf %127, %126 : vector<8x32xf32>
    %129 = arith.divf %127, %128 : vector<8x32xf32>
    %130 = vector.extract_strided_slice %118 {offsets = [0, 32], sizes = [8, 32], strides = [1, 1]} : vector<8x96xf32> to vector<8x32xf32>
    %131 = vector.extract_strided_slice %121 {offsets = [0, 32], sizes = [8, 32], strides = [1, 1]} : vector<8x96xf32> to vector<8x32xf32>
    %132 = arith.addf %130, %131 : vector<8x32xf32>
    %133 = arith.negf %132 : vector<8x32xf32>
    %134 = math.exp %133 : vector<8x32xf32>
    %cst_36 = arith.constant 1.000000e+00 : f32
    %135 = vector.broadcast %cst_36 : f32 to vector<8x32xf32>
    %136 = arith.addf %135, %134 : vector<8x32xf32>
    %137 = arith.divf %135, %136 : vector<8x32xf32>
    %138 = vector.extract_strided_slice %118 {offsets = [0, 64], sizes = [8, 32], strides = [1, 1]} : vector<8x96xf32> to vector<8x32xf32>
    %139 = vector.extract_strided_slice %121 {offsets = [0, 64], sizes = [8, 32], strides = [1, 1]} : vector<8x96xf32> to vector<8x32xf32>
    %140 = arith.mulf %129, %139 : vector<8x32xf32>
    %141 = arith.addf %138, %140 : vector<8x32xf32>
    %142 = math.tanh %141 : vector<8x32xf32>
    %cst_37 = arith.constant 1.000000e+00 : f32
    %143 = vector.broadcast %cst_37 : f32 to vector<8x32xf32>
    %144 = arith.subf %143, %137 : vector<8x32xf32>
    %145 = arith.mulf %144, %142 : vector<8x32xf32>
    %146 = arith.mulf %137, %112 : vector<8x32xf32>
    %147 = arith.addf %145, %146 : vector<8x32xf32>
    %c4_i32 = arith.constant 4 : i32
    %148 = arith.index_cast %c4_i32 : i32 to index
    %c0_38 = arith.constant 0 : index
    %c0_39 = arith.constant 0 : index
    %149 = vector.load %arg1[%148, %c0_38, %c0_39] : memref<8x8x32xf32, #tpu.memory_space<vmem>>, vector<1x8x32xf32>
    %150 = vector.shape_cast %149 : vector<1x8x32xf32> to vector<8x32xf32>
    %cst_40 = arith.constant dense<0.000000e+00> : vector<8x96xf32>
    %151 = tpu.matmul %150, %3, %cst_40 {dimension_numbers = #tpu.dot_dimension_numbers<[1], [0], [0], [1], [0, 0, 1, 1], [], []>} : vector<8x32xf32>, vector<32x96xf32>, vector<8x96xf32> -> vector<8x96xf32>
    %152 = vector.broadcast %5 : vector<1x96xf32> to vector<8x96xf32>
    %153 = arith.addf %151, %152 : vector<8x96xf32>
    %cst_41 = arith.constant dense<0.000000e+00> : vector<8x96xf32>
    %154 = tpu.matmul %147, %4, %cst_41 {dimension_numbers = #tpu.dot_dimension_numbers<[1], [0], [0], [1], [0, 0, 1, 1], [], []>} : vector<8x32xf32>, vector<32x96xf32>, vector<8x96xf32> -> vector<8x96xf32>
    %155 = vector.broadcast %6 : vector<1x96xf32> to vector<8x96xf32>
    %156 = arith.addf %154, %155 : vector<8x96xf32>
    %157 = vector.extract_strided_slice %153 {offsets = [0, 0], sizes = [8, 32], strides = [1, 1]} : vector<8x96xf32> to vector<8x32xf32>
    %158 = vector.extract_strided_slice %156 {offsets = [0, 0], sizes = [8, 32], strides = [1, 1]} : vector<8x96xf32> to vector<8x32xf32>
    %159 = arith.addf %157, %158 : vector<8x32xf32>
    %160 = arith.negf %159 : vector<8x32xf32>
    %161 = math.exp %160 : vector<8x32xf32>
    %cst_42 = arith.constant 1.000000e+00 : f32
    %162 = vector.broadcast %cst_42 : f32 to vector<8x32xf32>
    %163 = arith.addf %162, %161 : vector<8x32xf32>
    %164 = arith.divf %162, %163 : vector<8x32xf32>
    %165 = vector.extract_strided_slice %153 {offsets = [0, 32], sizes = [8, 32], strides = [1, 1]} : vector<8x96xf32> to vector<8x32xf32>
    %166 = vector.extract_strided_slice %156 {offsets = [0, 32], sizes = [8, 32], strides = [1, 1]} : vector<8x96xf32> to vector<8x32xf32>
    %167 = arith.addf %165, %166 : vector<8x32xf32>
    %168 = arith.negf %167 : vector<8x32xf32>
    %169 = math.exp %168 : vector<8x32xf32>
    %cst_43 = arith.constant 1.000000e+00 : f32
    %170 = vector.broadcast %cst_43 : f32 to vector<8x32xf32>
    %171 = arith.addf %170, %169 : vector<8x32xf32>
    %172 = arith.divf %170, %171 : vector<8x32xf32>
    %173 = vector.extract_strided_slice %153 {offsets = [0, 64], sizes = [8, 32], strides = [1, 1]} : vector<8x96xf32> to vector<8x32xf32>
    %174 = vector.extract_strided_slice %156 {offsets = [0, 64], sizes = [8, 32], strides = [1, 1]} : vector<8x96xf32> to vector<8x32xf32>
    %175 = arith.mulf %164, %174 : vector<8x32xf32>
    %176 = arith.addf %173, %175 : vector<8x32xf32>
    %177 = math.tanh %176 : vector<8x32xf32>
    %cst_44 = arith.constant 1.000000e+00 : f32
    %178 = vector.broadcast %cst_44 : f32 to vector<8x32xf32>
    %179 = arith.subf %178, %172 : vector<8x32xf32>
    %180 = arith.mulf %179, %177 : vector<8x32xf32>
    %181 = arith.mulf %172, %147 : vector<8x32xf32>
    %182 = arith.addf %180, %181 : vector<8x32xf32>
    %c5_i32 = arith.constant 5 : i32
    %183 = arith.index_cast %c5_i32 : i32 to index
    %c0_45 = arith.constant 0 : index
    %c0_46 = arith.constant 0 : index
    %184 = vector.load %arg1[%183, %c0_45, %c0_46] : memref<8x8x32xf32, #tpu.memory_space<vmem>>, vector<1x8x32xf32>
    %185 = vector.shape_cast %184 : vector<1x8x32xf32> to vector<8x32xf32>
    %cst_47 = arith.constant dense<0.000000e+00> : vector<8x96xf32>
    %186 = tpu.matmul %185, %3, %cst_47 {dimension_numbers = #tpu.dot_dimension_numbers<[1], [0], [0], [1], [0, 0, 1, 1], [], []>} : vector<8x32xf32>, vector<32x96xf32>, vector<8x96xf32> -> vector<8x96xf32>
    %187 = vector.broadcast %5 : vector<1x96xf32> to vector<8x96xf32>
    %188 = arith.addf %186, %187 : vector<8x96xf32>
    %cst_48 = arith.constant dense<0.000000e+00> : vector<8x96xf32>
    %189 = tpu.matmul %182, %4, %cst_48 {dimension_numbers = #tpu.dot_dimension_numbers<[1], [0], [0], [1], [0, 0, 1, 1], [], []>} : vector<8x32xf32>, vector<32x96xf32>, vector<8x96xf32> -> vector<8x96xf32>
    %190 = vector.broadcast %6 : vector<1x96xf32> to vector<8x96xf32>
    %191 = arith.addf %189, %190 : vector<8x96xf32>
    %192 = vector.extract_strided_slice %188 {offsets = [0, 0], sizes = [8, 32], strides = [1, 1]} : vector<8x96xf32> to vector<8x32xf32>
    %193 = vector.extract_strided_slice %191 {offsets = [0, 0], sizes = [8, 32], strides = [1, 1]} : vector<8x96xf32> to vector<8x32xf32>
    %194 = arith.addf %192, %193 : vector<8x32xf32>
    %195 = arith.negf %194 : vector<8x32xf32>
    %196 = math.exp %195 : vector<8x32xf32>
    %cst_49 = arith.constant 1.000000e+00 : f32
    %197 = vector.broadcast %cst_49 : f32 to vector<8x32xf32>
    %198 = arith.addf %197, %196 : vector<8x32xf32>
    %199 = arith.divf %197, %198 : vector<8x32xf32>
    %200 = vector.extract_strided_slice %188 {offsets = [0, 32], sizes = [8, 32], strides = [1, 1]} : vector<8x96xf32> to vector<8x32xf32>
    %201 = vector.extract_strided_slice %191 {offsets = [0, 32], sizes = [8, 32], strides = [1, 1]} : vector<8x96xf32> to vector<8x32xf32>
    %202 = arith.addf %200, %201 : vector<8x32xf32>
    %203 = arith.negf %202 : vector<8x32xf32>
    %204 = math.exp %203 : vector<8x32xf32>
    %cst_50 = arith.constant 1.000000e+00 : f32
    %205 = vector.broadcast %cst_50 : f32 to vector<8x32xf32>
    %206 = arith.addf %205, %204 : vector<8x32xf32>
    %207 = arith.divf %205, %206 : vector<8x32xf32>
    %208 = vector.extract_strided_slice %188 {offsets = [0, 64], sizes = [8, 32], strides = [1, 1]} : vector<8x96xf32> to vector<8x32xf32>
    %209 = vector.extract_strided_slice %191 {offsets = [0, 64], sizes = [8, 32], strides = [1, 1]} : vector<8x96xf32> to vector<8x32xf32>
    %210 = arith.mulf %199, %209 : vector<8x32xf32>
    %211 = arith.addf %208, %210 : vector<8x32xf32>
    %212 = math.tanh %211 : vector<8x32xf32>
    %cst_51 = arith.constant 1.000000e+00 : f32
    %213 = vector.broadcast %cst_51 : f32 to vector<8x32xf32>
    %214 = arith.subf %213, %207 : vector<8x32xf32>
    %215 = arith.mulf %214, %212 : vector<8x32xf32>
    %216 = arith.mulf %207, %182 : vector<8x32xf32>
    %217 = arith.addf %215, %216 : vector<8x32xf32>
    %c6_i32 = arith.constant 6 : i32
    %218 = arith.index_cast %c6_i32 : i32 to index
    %c0_52 = arith.constant 0 : index
    %c0_53 = arith.constant 0 : index
    %219 = vector.load %arg1[%218, %c0_52, %c0_53] : memref<8x8x32xf32, #tpu.memory_space<vmem>>, vector<1x8x32xf32>
    %220 = vector.shape_cast %219 : vector<1x8x32xf32> to vector<8x32xf32>
    %cst_54 = arith.constant dense<0.000000e+00> : vector<8x96xf32>
    %221 = tpu.matmul %220, %3, %cst_54 {dimension_numbers = #tpu.dot_dimension_numbers<[1], [0], [0], [1], [0, 0, 1, 1], [], []>} : vector<8x32xf32>, vector<32x96xf32>, vector<8x96xf32> -> vector<8x96xf32>
    %222 = vector.broadcast %5 : vector<1x96xf32> to vector<8x96xf32>
    %223 = arith.addf %221, %222 : vector<8x96xf32>
    %cst_55 = arith.constant dense<0.000000e+00> : vector<8x96xf32>
    %224 = tpu.matmul %217, %4, %cst_55 {dimension_numbers = #tpu.dot_dimension_numbers<[1], [0], [0], [1], [0, 0, 1, 1], [], []>} : vector<8x32xf32>, vector<32x96xf32>, vector<8x96xf32> -> vector<8x96xf32>
    %225 = vector.broadcast %6 : vector<1x96xf32> to vector<8x96xf32>
    %226 = arith.addf %224, %225 : vector<8x96xf32>
    %227 = vector.extract_strided_slice %223 {offsets = [0, 0], sizes = [8, 32], strides = [1, 1]} : vector<8x96xf32> to vector<8x32xf32>
    %228 = vector.extract_strided_slice %226 {offsets = [0, 0], sizes = [8, 32], strides = [1, 1]} : vector<8x96xf32> to vector<8x32xf32>
    %229 = arith.addf %227, %228 : vector<8x32xf32>
    %230 = arith.negf %229 : vector<8x32xf32>
    %231 = math.exp %230 : vector<8x32xf32>
    %cst_56 = arith.constant 1.000000e+00 : f32
    %232 = vector.broadcast %cst_56 : f32 to vector<8x32xf32>
    %233 = arith.addf %232, %231 : vector<8x32xf32>
    %234 = arith.divf %232, %233 : vector<8x32xf32>
    %235 = vector.extract_strided_slice %223 {offsets = [0, 32], sizes = [8, 32], strides = [1, 1]} : vector<8x96xf32> to vector<8x32xf32>
    %236 = vector.extract_strided_slice %226 {offsets = [0, 32], sizes = [8, 32], strides = [1, 1]} : vector<8x96xf32> to vector<8x32xf32>
    %237 = arith.addf %235, %236 : vector<8x32xf32>
    %238 = arith.negf %237 : vector<8x32xf32>
    %239 = math.exp %238 : vector<8x32xf32>
    %cst_57 = arith.constant 1.000000e+00 : f32
    %240 = vector.broadcast %cst_57 : f32 to vector<8x32xf32>
    %241 = arith.addf %240, %239 : vector<8x32xf32>
    %242 = arith.divf %240, %241 : vector<8x32xf32>
    %243 = vector.extract_strided_slice %223 {offsets = [0, 64], sizes = [8, 32], strides = [1, 1]} : vector<8x96xf32> to vector<8x32xf32>
    %244 = vector.extract_strided_slice %226 {offsets = [0, 64], sizes = [8, 32], strides = [1, 1]} : vector<8x96xf32> to vector<8x32xf32>
    %245 = arith.mulf %234, %244 : vector<8x32xf32>
    %246 = arith.addf %243, %245 : vector<8x32xf32>
    %247 = math.tanh %246 : vector<8x32xf32>
    %cst_58 = arith.constant 1.000000e+00 : f32
    %248 = vector.broadcast %cst_58 : f32 to vector<8x32xf32>
    %249 = arith.subf %248, %242 : vector<8x32xf32>
    %250 = arith.mulf %249, %247 : vector<8x32xf32>
    %251 = arith.mulf %242, %217 : vector<8x32xf32>
    %252 = arith.addf %250, %251 : vector<8x32xf32>
    %c7_i32 = arith.constant 7 : i32
    %253 = arith.index_cast %c7_i32 : i32 to index
    %c0_59 = arith.constant 0 : index
    %c0_60 = arith.constant 0 : index
    %254 = vector.load %arg1[%253, %c0_59, %c0_60] : memref<8x8x32xf32, #tpu.memory_space<vmem>>, vector<1x8x32xf32>
    %255 = vector.shape_cast %254 : vector<1x8x32xf32> to vector<8x32xf32>
    %cst_61 = arith.constant dense<0.000000e+00> : vector<8x96xf32>
    %256 = tpu.matmul %255, %3, %cst_61 {dimension_numbers = #tpu.dot_dimension_numbers<[1], [0], [0], [1], [0, 0, 1, 1], [], []>} : vector<8x32xf32>, vector<32x96xf32>, vector<8x96xf32> -> vector<8x96xf32>
    %257 = vector.broadcast %5 : vector<1x96xf32> to vector<8x96xf32>
    %258 = arith.addf %256, %257 : vector<8x96xf32>
    %cst_62 = arith.constant dense<0.000000e+00> : vector<8x96xf32>
    %259 = tpu.matmul %252, %4, %cst_62 {dimension_numbers = #tpu.dot_dimension_numbers<[1], [0], [0], [1], [0, 0, 1, 1], [], []>} : vector<8x32xf32>, vector<32x96xf32>, vector<8x96xf32> -> vector<8x96xf32>
    %260 = vector.broadcast %6 : vector<1x96xf32> to vector<8x96xf32>
    %261 = arith.addf %259, %260 : vector<8x96xf32>
    %262 = vector.extract_strided_slice %258 {offsets = [0, 0], sizes = [8, 32], strides = [1, 1]} : vector<8x96xf32> to vector<8x32xf32>
    %263 = vector.extract_strided_slice %261 {offsets = [0, 0], sizes = [8, 32], strides = [1, 1]} : vector<8x96xf32> to vector<8x32xf32>
    %264 = arith.addf %262, %263 : vector<8x32xf32>
    %265 = arith.negf %264 : vector<8x32xf32>
    %266 = math.exp %265 : vector<8x32xf32>
    %cst_63 = arith.constant 1.000000e+00 : f32
    %267 = vector.broadcast %cst_63 : f32 to vector<8x32xf32>
    %268 = arith.addf %267, %266 : vector<8x32xf32>
    %269 = arith.divf %267, %268 : vector<8x32xf32>
    %270 = vector.extract_strided_slice %258 {offsets = [0, 32], sizes = [8, 32], strides = [1, 1]} : vector<8x96xf32> to vector<8x32xf32>
    %271 = vector.extract_strided_slice %261 {offsets = [0, 32], sizes = [8, 32], strides = [1, 1]} : vector<8x96xf32> to vector<8x32xf32>
    %272 = arith.addf %270, %271 : vector<8x32xf32>
    %273 = arith.negf %272 : vector<8x32xf32>
    %274 = math.exp %273 : vector<8x32xf32>
    %cst_64 = arith.constant 1.000000e+00 : f32
    %275 = vector.broadcast %cst_64 : f32 to vector<8x32xf32>
    %276 = arith.addf %275, %274 : vector<8x32xf32>
    %277 = arith.divf %275, %276 : vector<8x32xf32>
    %278 = vector.extract_strided_slice %258 {offsets = [0, 64], sizes = [8, 32], strides = [1, 1]} : vector<8x96xf32> to vector<8x32xf32>
    %279 = vector.extract_strided_slice %261 {offsets = [0, 64], sizes = [8, 32], strides = [1, 1]} : vector<8x96xf32> to vector<8x32xf32>
    %280 = arith.mulf %269, %279 : vector<8x32xf32>
    %281 = arith.addf %278, %280 : vector<8x32xf32>
    %282 = math.tanh %281 : vector<8x32xf32>
    %cst_65 = arith.constant 1.000000e+00 : f32
    %283 = vector.broadcast %cst_65 : f32 to vector<8x32xf32>
    %284 = arith.subf %283, %277 : vector<8x32xf32>
    %285 = arith.mulf %284, %282 : vector<8x32xf32>
    %286 = arith.mulf %277, %252 : vector<8x32xf32>
    %287 = arith.addf %285, %286 : vector<8x32xf32>
    %c8_i32 = arith.constant 8 : i32
    %c0_66 = arith.constant 0 : index
    %c0_67 = arith.constant 0 : index
    %288 = vector.load %arg6[%c0_66, %c0_67] : memref<8x32xf32, #tpu.memory_space<vmem>>, vector<8x32xf32>
    tpu.vector_store %arg6[%c0_66, %c0_67], %287 {strides = array<i32>} : memref<8x32xf32, #tpu.memory_space<vmem>>, vector<8x32xf32>,
    return
  }
  func.func @transform_0(%arg0: i32) -> (i32, i32, i32) {
    %c0_i32 = arith.constant 0 : i32
    %c0_i32_0 = arith.constant 0 : i32
    %c0_i32_1 = arith.constant 0 : i32
    return %arg0, %c0_i32, %c0_i32_0 : i32, i32, i32
  }
  func.func @transform_1(%arg0: i32) -> (i32, i32) {
    %c0_i32 = arith.constant 0 : i32
    %c0_i32_0 = arith.constant 0 : i32
    %c0_i32_1 = arith.constant 0 : i32
    return %c0_i32, %c0_i32_0 : i32, i32
  }
  func.func @transform_2(%arg0: i32) -> (i32, i32) {
    %c0_i32 = arith.constant 0 : i32
    %c0_i32_0 = arith.constant 0 : i32
    %c0_i32_1 = arith.constant 0 : i32
    return %c0_i32, %c0_i32_0 : i32, i32
  }
  func.func @transform_3(%arg0: i32) -> (i32, i32) {
    %c0_i32 = arith.constant 0 : i32
    %c0_i32_0 = arith.constant 0 : i32
    %c0_i32_1 = arith.constant 0 : i32
    return %c0_i32, %c0_i32_0 : i32, i32
  }
  func.func @transform_4(%arg0: i32) -> (i32, i32) {
    %c0_i32 = arith.constant 0 : i32
    %c0_i32_0 = arith.constant 0 : i32
    %c0_i32_1 = arith.constant 0 : i32
    return %c0_i32, %c0_i32_0 : i32, i32
  }
  func.func @transform_5(%arg0: i32) -> (i32, i32) {
    %c0_i32 = arith.constant 0 : i32
    %c0_i32_0 = arith.constant 0 : i32
    %c0_i32_1 = arith.constant 0 : i32
    return %c0_i32, %c0_i32_0 : i32, i32
  }
}

</mosaic_0001>

<bundles_post_ra>
// kernel: seq2seq_forward.3
= control target key start
LH: loop header
LB: loop body
LE: loop exit
PB: predicated region body
PF: predicated region fallthrough
CT: control target
= control target key end

     0   :  { %s1361_s0 = inlined_call_operand.vmem [shape: s32[6], index: 0, kind: input, shape index: {}]   ;;  %s1362_s1 = inlined_call_operand.vmem [shape: s32[6,8,1], index: 1, kind: input, shape index: {}]   ;;  %s1363_s2 = inlined_call_operand.vmem [shape: f32[8,32], index: 2, kind: input, shape index: {}]   ;;  %s1364_s3 = inlined_call_operand.vmem [shape: f32[64,32], index: 3, kind: input, shape index: {}]   ;;  %s1365_s4 = inlined_call_operand.vmem [shape: f32[32,96], index: 4, kind: input, shape index: {}]   ;;  %s1366_s5 = inlined_call_operand.vmem [shape: f32[32,96], index: 5, kind: input, shape index: {}]   ;;  %s1367_s6 = inlined_call_operand.vmem [shape: f32[1,96], index: 6, kind: input, shape index: {}]   ;;  %s1368_s7 = inlined_call_operand.vmem [shape: f32[1,96], index: 7, kind: input, shape index: {}]   ;;  %s1369_s8 = inlined_call_operand.vmem [shape: f32[32,128], index: 8, kind: input, shape index: {}]   ;;  %s1370_s9 = inlined_call_operand.vmem [shape: f32[1,128], index: 9, kind: input, shape index: {}]   ;;  %s1371_s10 = inlined_call_operand.hbm [shape: f32[6,8,128], index: 10, kind: output, shape index: {}]  }
   0x1   :  { %s15_s15 = sshll.u32 %s1361_s0, 4  ;;  %s16_s15 = int_to_ptr.vmem [resolvable:$true] %s15_s15 }
   0x2   :  { %s1011_s16 = scalar_lea.vmem %s16_s15, 16  ;;  %p1016_p1 = scmp.lt.s32.totalorder %s16_s15, %s16_s15 }
   0x3   :  { %p1012_p0 = scmp.ne.s32.totalorder %s16_s15, %s1011_s16  ;;  %p1017_p2 = scmp.lt.s32.totalorder %s1011_s16, %s1011_s16 }
   0x5   :  { %p1018_p3 = por %p1017_p2, %p1016_p1 }
   0x7   :  { %p1019_p4 = pnand %p1018_p3, %p1012_p0 }
   0x9   :  { %1022 = shalt.err (!%p1019_p4)  }
   0xa   :  { %s1089_s17 = smov [#allocation5]  }
   0xb   :  { %18 = dma.vmem_to_smem %s16_s15, 16, %s1089_s17, [#allocation4] }
   0xc   :  { %1067 = dma.done.wait [#allocation4], 16 }
   0xd   :  { %1068 = vsyncadd [#allocation4], 4294967280 }
   0xe   :  { %20 = sfence }
   0xf   :  { %21 = vsyncpa [#allocation7], 0 }
  0x10   :  { %23 = vsyncpa [#allocation7 + $0x1], 0  ;;  %s1157_s18 = smov 0   ;;  %s1159_s19 = smov 0  }
  0x11   :  { %s1161_s0 = smov 0   ;;  %s1163_s20 = smov 0  }
  0x12 LB: > { %s1178_s21 = sadd.s32 4294967295, %s1087_s20   ;;  %s829_s22 = sadd.s32 4294967294, %s1087_s20   ;;  %s1087_s20 = sphi %s1163_s20, %s1377_s20   ;;  %s1083_s0 = sphi %s1161_s0, %s1376_s0   ;;  %s1079_s19 = sphi %s1159_s19, %s1375_s19   ;;  %s1075_s18 = sphi %s1157_s18, %s1374_s18  }
  0x13   : > { %s1182_s23 = sadd.s32 1, %s1087_s20   ;;  %s230_s24 = sadd.s32 1, %s1083_s0 }
  0x14   : > { %s227_s25 = ssub.s32 %s1087_s20, %s1182_s23  ;;  %p240_p5 = scmp.ne.s32.totalorder %s1083_s0, %s1079_s19 }
  0x15   : > { %p228_p6 = scmp.eq.s32.totalorder %s227_s25, 0  ;;  %p241_p7 = scmp.eq.s32.totalorder %s1178_s21, 5 }
  0x16   : > { %p246_p8 = scmp.ne.s32.totalorder %s1079_s19, %s1075_s18  ;;  %p247_p9 = scmp.eq.s32.totalorder %s829_s22, 5 }
  0x17   : > { %s1193_s26 = scalar_select %p228_p6, %s1083_s0, %s230_s24  }
  0x18   : > { %p1195_p10 = por %p241_p7, %p240_p5  ;;  %p1199_p11 = por %p247_p9, %p246_p8 }
  0x19   : > { %p832_p12 = scmp.ge.s32.totalorder %s1087_s20, 1  ;;  %p296_p13 = scmp.lt.s32.totalorder %s1087_s20, 7 }
  0x1b   : > { %p297_p0 = pnand %p832_p12, %p296_p13 }
  0x1c   : > { %s328_s29 = sand.u32 (!%p297_p0), 1, %s1079_s19   ;;  %p331_p1 = scmp.lt.s32.totalorder (!%p297_p0), %s1178_s21, 5 }
  0x1d   : > { %300 = sbr.rel (%p297_p0) target bundleno = 1770 (0x6ea), region = 56  ;;  %s833_s30 = sshll.u32 (!%p297_p0), %s328_s29, 3 }
  0x1e   : > { %s1215_s16 = scalar_lea.vmem (!%p297_p0), [#allocation6], %s833_s30  ;;  %p835_p2 = scmp.ne.s32.totalorder (!%p297_p0), %s1178_s21, 0 }
  0x24   : > { %s332_s11 = scalar_select %p331_p1, %s1178_s21, 5 }
  0x25   : > { %338 = sbr.rel (%p835_p2) target bundleno = 44 (0x2c), region = 60  ;;  %v340_v0 = vld [vmem:[%s1363_s2] sm:$0xff] (!%p835_p2)  ;;  %vm341_vm0 = vcmask (!%p835_p2), 261120   ;;  %vm344_vm1 = vcmask (!%p835_p2), 7168   ;;  %v1090_v2 = vmov (!%p835_p2), 0.0  }
  0x26   : > { %s834_s12 = sshll.u32 %s332_s11, 3  ;;  %339 = vst [vmem:[%s1215_s16] sm:$0xff] (!%p835_p2), %v1090_v2  ;;  %342 = vst.msk [vmem:[#allocation2] sm:$0xff] (!%p835_p2), %vm341_vm0, %v340_v0 }
  0x27   : > { %s1213_s15 = scalar_lea.vmem %s1362_s1, %s834_s12 }
  0x28   : > { %v343_v1 = vld [vmem:[%s1213_s15] sm:$0xff] (!%p835_p2) }
  0x29   : > { %345 = vst.msk [vmem:[#allocation3] sm:$0xff] (!%p835_p2), %vm344_vm1, %v343_v1 }
  0x2c PF: > { %p836_p3 = scmp.le.s32.totalorder %s1178_s21, 0 }
  0x2d   : > { %v360_v4 = vld [vmem:[%s1364_s3] sm:$0xff] (!%p836_p3)  ;;  %v361_v5 = vld [vmem:[%s1364_s3 + $0x8] sm:$0xff] (!%p836_p3)  ;;  %v1091_v6 = vmov (!%p836_p3), 0   ;;  %v1092_v7 = vmov (!%p836_p3), 0.0|0.0   ;;  %v362_v9 = vld [vmem:[%s1364_s3 + $0x10] sm:$0xff] (!%p836_p3)  ;;  %vm1093_vm2 = vmmov (!%p836_p3), 0   ;;  %v352_v25 = vlaneseq (!%p836_p3) }
  0x2e   : > { %349 = sbr.rel (%p836_p3) target bundleno = 1746 (0x6d2), region = 64  ;;  %1004 = vset.pattern.permute.xlu0 (!%p836_p3), %v1091_v6  ;;  %926 = vmatprep.subr.bf16.mxu0 (!%p836_p3), %v1092_v7  ;;  %v927_v8 = vpack.c.bf16 (!%p836_p3), %v361_v5, %v360_v4  ;;  %v363_v10 = vld [vmem:[%s1364_s3 + $0x18] sm:$0xff] (!%p836_p3)  ;;  %v364_v12 = vld [vmem:[%s1364_s3 + $0x20] sm:$0xff] (!%p836_p3)  ;;  %v365_v13 = vld [vmem:[%s1364_s3 + $0x28] sm:$0xff] (!%p836_p3)  ;;  %v1094_v14 = vmov (!%p836_p3), 0.0   ;;  %vm368_vm3 = vcmask (!%p836_p3), 523264  }
  0x2f   : > { %938 = vmatprep.subr.bf16.mxu1 (!%p836_p3), %v1092_v7  ;;  %v930_v11 = vpack.c.bf16 (!%p836_p3), %v363_v10, %v362_v9  ;;  %890 = vmatprep.mubr.msk.f32.mxu0 (!%p836_p3), %vm1093_vm2, %v1094_v14  ;;  %v442_v15 = vld [vmem:[%s1365_s4] sm:$0xff] (!%p836_p3)  ;;  %v443_v16 = vld [vmem:[%s1365_s4 + $0x8] sm:$0xff] (!%p836_p3)  ;;  %v444_v17 = vld [vmem:[%s1365_s4 + $0x10] sm:$0xff] (!%p836_p3)  ;;  %v933_v20 = vpack.c.bf16 (!%p836_p3), %v365_v13, %v364_v12  ;;  %v1270_v26 = vand.u32 (!%p836_p3), 127, %v352_v25  ;;  %vm458_vm5 = vcmask (!%p836_p3), 261120   ;;  %s1095_s17 = smov (!%p836_p3), 64  }
  0x30   : > { %v351_v3 = vld [vmem:[#allocation3] sm:$0xff] (!%p836_p3)  ;;  %928 = vmatpush3.bf16.msra.mxu0 (!%p836_p3), %v927_v8  ;;  %901 = vmatprep.mubr.msk.f32.mxu1 (!%p836_p3), %vm1093_vm2, %v1094_v14  ;;  %v939_v18 = vpack.c.bf16 (!%p836_p3), %v443_v16, %v442_v15  ;;  %v445_v19 = vld [vmem:[%s1365_s4 + $0x18] sm:$0xff] (!%p836_p3)  ;;  %v366_v22 = vld [vmem:[%s1364_s3 + $0x30] sm:$0xff] (!%p836_p3)  ;;  %s1096_s22 = smov (!%p836_p3), 32   ;;  %s745_s12 = sld [smem:[#allocation5 + %s1178_s21]] (!%p836_p3)  ;;  %vm752_vm9 = vcmask (!%p836_p3), 7168  }
  0x31   : > { %355 = vperm.xlu0 (!%p836_p3), %1004, %v351_v3   ;;  %929 = vmatprep.subr.bf16.mxu0 (!%p836_p3), %v1092_v7  ;;  %v942_v21 = vpack.c.bf16 (!%p836_p3), %v445_v19, %v444_v17  ;;  %v367_v23 = vld [vmem:[%s1364_s3 + $0x38] sm:$0xff] (!%p836_p3)  ;;  %v446_v29 = vld [vmem:[%s1366_s5] sm:$0xff] (!%p836_p3)  ;;  %v447_v30 = vld [vmem:[%s1366_s5 + $0x8] sm:$0xff] (!%p836_p3) }
  0x32   : > { %940 = vmatpush3.bf16.msra.mxu1 (!%p836_p3), %v939_v18  ;;  %v936_v24 = vpack.c.bf16 (!%p836_p3), %v367_v23, %v366_v22  ;;  %v945_v31 = vpack.c.bf16 (!%p836_p3), %v447_v30, %v446_v29  ;;  %v448_v32 = vld [vmem:[%s1366_s5 + $0x10] sm:$0xff] (!%p836_p3)  ;;  %v449_v33 = vld [vmem:[%s1366_s5 + $0x18] sm:$0xff] (!%p836_p3)  ;;  %v350_v37 = vld [vmem:[#allocation2] sm:$0xff] (!%p836_p3) }
  0x33   : > { %941 = vmatprep.subr.bf16.mxu1 (!%p836_p3), %v1092_v7  ;;  %v948_v36 = vpack.c.bf16 (!%p836_p3), %v449_v33, %v448_v32  ;;  %v841_v40 = vld [vmem:[%s1368_s7] ss:$0 sm:$0xff] (!%p836_p3)  ;;  %v641_v56 = vld [vmem:[%s1369_s8 + $0x8] sm:$0xff] (!%p836_p3)  ;;  %v642_v57 = vld [vmem:[%s1369_s8 + $0x10] sm:$0xff] (!%p836_p3) }
  0x34   : > { %931 = vmatpush3.bf16.msra.mxu0 (!%p836_p3), %v930_v11  ;;  %v839_v44 = vld [vmem:[%s1367_s6] ss:$0 sm:$0xff] (!%p836_p3)  ;;  %v643_v59 = vld [vmem:[%s1369_s8 + $0x18] sm:$0xff] (!%p836_p3) }
  0x35   : > { %932 = vmatprep.subr.bf16.mxu0 %v1092_v7  ;;  %v640_v55 = vld [vmem:[%s1369_s8] sm:$0xff]  ;;  %v954_v60 = vpack.c.bf16 %v643_v59, %v642_v57 }
  0x36   : > { %943 = vmatpush3.bf16.msra.mxu1 %v942_v21  ;;  %v951_v58 = vpack.c.bf16 %v641_v56, %v640_v55  ;;  %v844_v5 = vld [vmem:[%s1370_s9] ss:$0 sm:$0xff]  ;;  %p746_p4 = scmp.gt.s32.totalorder %s745_s12, 0 }
  0x37   : > { %944 = vmatprep.subr.bf16.mxu1 %v1092_v7  ;;  %v747_v22 = vld [vmem:[%s1213_s15] sm:$0xff] }
  0x38   : > { %934 = vmatpush3.bf16.msra.mxu0 %v933_v20  ;;  %s748_s13 = scalar_select %p746_p4, 1, 0 }
  0x39   : > { %935 = vmatprep.subr.bf16.mxu0 %v1092_v7 }
  0x3a   : > { %v749_v18 = vstv %s748_s13 }
  0x3b   : > { %vm750_vm8 = vcmp.eq.s32.totalorder %v749_v18, 1 }
  0x3c   : > { %937 = vmatpush3.bf16.msra.mxu0 %v936_v24 }
  0x3d   : > { %950 = vmatprep.subr.bf16.mxu0 %v1092_v7 }
  0xb0   : > { %v356_v27 = vpop.permute.xlu0 %355 }
  0xb1   : > { %vm357_vm4 = vcmp.eq.s32.totalorder %v1270_v26, %v356_v27 }
  0xb2   : > { %v837_v28 = vsel %vm357_vm4, 1.0, %v1094_v14 }
  0xb3   : > { %891 = vmatmul.mubr.msk.f32.vlgmr.msra.gmra.mrb[0].mxu0 %vm368_vm3, %v837_v28 }
  0xb4   : > { %923 = vmatprep.mubr.msk.f32.mxu0 %vm1093_vm2, %v1094_v14  ;;  %952 = vmatpush3.bf16.msra.mxu0 %v951_v58 }
  0xb5   : > { %953 = vmatprep.subr.bf16.mxu0 %v1092_v7 }
  0xb8   : > { %955 = vmatpush3.bf16.msra.mxu0 %v954_v60 }
 0x186   : > { %v438_v34 = vpop.f32.mrb[0].mxu0 }
 0x187   : > { %v892_v35 = vpop.f32.mrb[1].mxu0  ;;  %902 = vmatmul.mubr.msk.f32.vlgmr.msra.gmra.mrb[0].mxu1 %vm458_vm5, %v438_v34 }
 0x188   : > { %946 = vmatpush3.bf16.msra.mxu1 %v945_v31  ;;  %912 = vmatprep.mubr.msk.f32.mxu1 %vm1093_vm2, %v1094_v14 }
 0x189   : > { %947 = vmatprep.subr.bf16.mxu1 %v1092_v7 }
 0x18c   : > { %949 = vmatpush3.bf16.msra.mxu1 %v948_v36 }
 0x18f   : > { %913 = vmatmul.mubr.msk.f32.vlgmr.msra.gmra.mrb[2].mxu1 %vm458_vm5, %v350_v37 }
 0x25a   : > { %v528_v38 = vpop.f32.mrb[0].mxu1 }
 0x25b   : > { %v903_v39 = vpop.f32.mrb[1].mxu1  ;;  %v529_v45 = vadd.f32 %v839_v44, %v528_v38 }
 0x262   : > { %v607_v41 = vpop.f32.mrb[2].mxu1 }
 0x263   : > { %v608_v42 = vadd.f32 %v841_v40, %v607_v41  ;;  %v914_v43 = vpop.f32.mrb[3].mxu1 }
 0x265   : > { %619 = vrot.lane.b32.xlu0 %v608_v42, %s1095_s17  ;;  %v611_v46 = vadd.f32 %v608_v42, %v529_v45 }
 0x267   : > { %v843_v47 = vmul.f32 -1.442695, %v611_v46 }
 0x269   : > { %635 = vrot.lane.b32.xlu0 %v350_v37, %s1096_s22  ;;  %1005 = vpow2.f32 %v843_v47 }
 0x273   : > { %v1006_v48 = vpop.eup %1005 }
 0x274   : > { %v615_v49 = vadd.f32 1.0, %v1006_v48 }
 0x276   : > { %1007 = vrcp.f32 %v615_v49 }
 0x280   : > { %v1008_v50 = vpop.eup %1007 }
 0x281   : > { %v629_v63 = vsub.f32 1.0, %v1008_v50 }
 0x2d7   : > { %v620_v51 = vpop.permute.xlu0 %619 }
 0x2d8   : > { %v622_v52 = vmul.f32 %v1008_v50, %v620_v51 }
 0x2da   : > { %624 = vrot.lane.b32.xlu1 %v622_v52, %s1095_s17  ;;  %s1097_s17 = smov 96  }
 0x2db   : > { %v636_v62 = vpop.permute.xlu0 %635 }
 0x2dc   : > { %v638_v1 = vmul.f32 %v1008_v50, %v636_v62 }
 0x34c   : > { %v625_v53 = vpop.permute.xlu1 %624 }
 0x34d   : > { %v627_v54 = vadd.f32 %v625_v53, %v529_v45 }
 0x34f   : > { %1009 = vtanh.f32 %v627_v54 }
 0x359   : > { %v1010_v61 = vpop.eup %1009 }
 0x35a   : > { %631 = vrot.lane.b32.xlu1 %v1010_v61, %s1097_s17 }
 0x3cc   : > { %v632_v0 = vpop.permute.xlu1 %631 }
 0x3cd   : > { %v634_v2 = vmul.f32 %v632_v0, %v629_v63 }
 0x3cf   : > { %v639_v3 = vadd.f32 %v638_v1, %v634_v2 }
 0x3d1   : > { %652 = vrot.lane.b32.xlu1 %v639_v3, %s1097_s17 }
 0x443   : > { %v653_v4 = vpop.permute.xlu1 %652 }
 0x444   : > { %755 = vst.msk [vmem:[#allocation2] sm:$0xff] %vm458_vm5, %v653_v4  ;;  %924 = vmatmul.mubr.msk.f32.vlgmr.msra.gmra.mrb[2].mxu0 %vm458_vm5, %v653_v4 }
 0x517   : > { %v722_v6 = vpop.f32.mrb[2].mxu0 }
 0x518   : > { %v723_v7 = vadd.f32 %v844_v5, %v722_v6  ;;  %v925_v8 = vpop.f32.mrb[3].mxu0 }
 0x51a   : > { %726 = vst [vmem:[%s1215_s16] sm:$0xff] %v723_v7  ;;  %727 = vmax.xlane.f32.xlu0 %v723_v7 }
 0x5a7   : > { %v728_v9 = vpop.xlane.xlu0 %727 }
 0x5a8   : > { %vm729_vm6 = vcmp.eq.f32.partialorder %v723_v7, %v728_v9 }
 0x5a9   : > { %v730_v10 = vsel %vm729_vm6, %v1270_v26, 128 }
 0x5aa   : > { %v732_v11 = vshra.s32 %v730_v10, 16  ;;  %v731_v13 = vand.u32 65535, %v730_v10 }
 0x5ac   : > { %v734_v12 = vcvt.s32.f32 %v732_v11  ;;  %v733_v15 = vcvt.s32.f32 %v731_v13 }
 0x5ae   : > { %735 = vmin.xlane.f32.xlu1 %v734_v12 }
 0x63b   : > { %v736_v14 = vpop.xlane.xlu1 %735 }
 0x63c   : > { %vm737_vm7 = vcmp.eq.f32.partialorder %v734_v12, %v736_v14  ;;  %v742_v17 = vcvt.f32.s32 %v736_v14 }
 0x63d   : > { %v738_v16 = vsel %vm737_vm7, %v733_v15, inf }
 0x63e   : > { %739 = vmin.xlane.f32.xlu0 %v738_v16  ;;  %v743_v20 = vshll.u32 %v742_v17, 16 }
 0x6cb   : > { %v740_v19 = vpop.xlane.xlu0 %739 }
 0x6cc   : > { %v741_v21 = vcvt.f32.s32 %v740_v19 }
 0x6ce   : > { %v744_v23 = vadd.s32 %v743_v20, %v741_v21 }
 0x6d0   : > { %v751_v24 = vsel %vm750_vm8, %v747_v22, %v744_v23 }
 0x6d1   : > { %753 = vst.msk [vmem:[#allocation3] sm:$0xff] %vm752_vm9, %v751_v24 }
 0x6d2 PF: > { %s847_s14 = sshll.u32 %s1178_s21, 7  ;;  %s770_s17 = sshll.u32 %s1215_s16, 4  ;;  %s771_s17 = int_to_ptr.vmem [resolvable:$true] %s770_s17 }
 0x6d3   : > { %s1322_s25 = scalar_lea.hbm %s1371_s10, %s847_s14  ;;  %s757_s15 = scalar_lea.sflag [#allocation7], %s328_s29 }
 0x6d4   : > { %s1023_s30 = scalar_lea.vmem %s771_s17, 128  ;;  %s1098_s11 = smov [#allocation6]  }
 0x6d5   : > { %p1024_p5 = scmp.ne.s32.totalorder %s771_s17, %s1023_s30  ;;  %s1027_s12 = sshll.u32 %s1098_s11, 4  ;;  %s1028_s12 = int_to_ptr.vmem [resolvable:$false] %s1027_s12 }
 0x6d6   : > { %s1029_s13 = scalar_lea.vmem %s1028_s12, 256  ;;  %p1030_p8 = scmp.lt.s32.totalorder %s771_s17, %s1028_s12 }
 0x6d7   : > { %p1025_p6 = pnand %p1024_p5, %p1195_p10  ;;  %p1031_p9 = scmp.lt.s32.totalorder %s1029_s13, %s1023_s30 }
 0x6d9   : > { %p1026_p7 = pneg %p1025_p6  ;;  %p1032_p12 = por %p1031_p9, %p1030_p8 }
 0x6db   : > { %p1033_p13 = pnand %p1032_p12, %p1026_p7 }
 0x6dd   : > { %1036 = shalt.err (!%p1033_p13)
}
 0x6de   : > { %s1037_s21 = scalar_lea.hbm %s1322_s25, 128  ;;  %s1041_s14 = scalar_lea.hbm %s1371_s10, 768 }
 0x6df   : > { %p1038_p0 = scmp.ne.s32.totalorder %s1322_s25, %s1037_s21  ;;  %p1042_p3 = scmp.lt.u32.totalorder %s1322_s25, %s1371_s10 }
 0x6e0   : > { %p1043_p4 = scmp.lt.u32.totalorder %s1041_s14, %s1037_s21  ;;  %p1045_p6 = scmp.lt.u32.totalorder %s1037_s21, %s1322_s25 }
 0x6e1   : > { %p1039_p1 = pnand %p1038_p0, %p1195_p10 }
 0x6e2   : > { %p1044_p5 = por %p1043_p4, %p1042_p3 }
 0x6e3   : > { %p1040_p2 = pneg %p1039_p1 }
 0x6e4   : > { %p1046_p7 = por %p1045_p6, %p1044_p5 }
 0x6e6   : > { %p1047_p8 = pnand %p1046_p7, %p1040_p2 }
 0x6e8   : > { %1050 = shalt.err (!%p1047_p8)
}
 0x6e9   : > { %956 = dma.vmem_to_hbm [thread:$0]  (%p1195_p10), %s771_s17, 128, %s1322_s25, %s757_s15  }
 0x6ea PF: > { %p962_p9 = scmp.ge.s32.totalorder %s1087_s20, 2  ;;  %s782_s30 = sand.u32 1, %s1075_s18  }
 0x6eb   : > { %s783_s11 = scalar_lea.sflag [#allocation7], %s782_s30 }
 0x6ec   : > { %p959_p12 = pnand %p962_p9, %p1199_p11 }
 0x6ee   : > { %1070 = dma.done.wait (!%p959_p12), %s783_s11, 128  }
 0x6ef   : > { %1072 = vsyncadd (!%p959_p12), %s783_s11, 4294967168  ;;  %p26_p13 = scmp.ge.s32.totalorder %s1182_s23, 8   ;;  %s1374_s18 = smov %s1079_s19 }
 0x6f0   : > { %s1375_s19 = smov %s1083_s0  ;;  %s1376_s0 = smov %s1193_s26 }
 0x6f1   : > { %s1377_s20 = smov %s1182_s23  ;;  %28 = sbr.rel (!%p26_p13) target bundleno = 18 (0x12), region = 99 }
 0x6f8   :  { %788 = vsyncpa [#allocation7], 1 }
 0x6f9   :  { %790 = vsyncpa [#allocation7 + $0x1], 1 }

// kernel: seq2seq_forward.2
= control target key start
LH: loop header
LB: loop body
LE: loop exit
PB: predicated region body
PF: predicated region fallthrough
CT: control target
= control target key end

     0   :  { %s2185_s18 = smov 0   ;;  %s2421_s0 = inlined_call_operand.vmem [shape: f32[16,8,32], index: 0, kind: input, shape index: {}]   ;;  %s2422_s1 = inlined_call_operand.vmem [shape: f32[32,96], index: 1, kind: input, shape index: {}]   ;;  %s2423_s2 = inlined_call_operand.vmem [shape: f32[32,96], index: 2, kind: input, shape index: {}]   ;;  %s2424_s3 = inlined_call_operand.vmem [shape: f32[1,96], index: 3, kind: input, shape index: {}]   ;;  %s2425_s4 = inlined_call_operand.vmem [shape: f32[1,96], index: 4, kind: input, shape index: {}]   ;;  %s2426_s5 = inlined_call_operand.vmem [shape: f32[8,32], index: 5, kind: output, shape index: {}]  }
   0x1 LB: > { %s1683_s19 = sadd.s32 4294967295, %s2146_s18   ;;  %p1686_p0 = scmp.ge.s32.totalorder %s2146_s18, 1  ;;  %s2146_s18 = sphi %s2185_s18, %s15_s18  }
   0x2   : > { %p183_p1 = scmp.lt.s32.totalorder %s2146_s18, 3 }
   0x4   : > { %p184_p2 = pnand %p1686_p0, %p183_p1 }
   0x5   : > { %s1687_s20 = sshll.u32 (!%p184_p2), %s1683_s19, 3  ;;  %p1689_p4 = scmp.ne.s32.totalorder (!%p184_p2), %s1683_s19, 0 }
   0x6   : > { %187 = sbr.rel (%p184_p2) target bundleno = 5580 (0x15cc), region = 40  ;;  %p207_p3 = scmp.lt.s32.totalorder (!%p184_p2), %s1687_s20, 15 }
   0xd   : > { %s2428_s20 = smov (!%p207_p3, %s1687_s20), 15  ;;  %215 = sbr.rel (%p1689_p4) target bundleno = 20 (0x14), region = 44 }
   0xe   : > { %s1688_s21 = sshll.u32 %s2428_s20, 3  ;;  %vm216_vm0 = vcmask (!%p1689_p4), 261120   ;;  %v2148_v0 = vmov (!%p1689_p4), 0.0  }
   0xf   : > { %s2196_s24 = scalar_lea.vmem %s2421_s0, %s1688_s21  ;;  %217 = vst.msk [vmem:[%s2426_s5] sm:$0xff] (!%p1689_p4), %vm216_vm0, %v2148_v0 }
  0x14 PF: > { %v218_v1 = vld [vmem:[%s2422_s1] sm:$0xff]  ;;  %v219_v2 = vld [vmem:[%s2422_s1 + $0x8] sm:$0xff]  ;;  %v2149_v4 = vmov 0.0|0.0   ;;  %v220_v7 = vld [vmem:[%s2422_s1 + $0x10] sm:$0xff]  ;;  %vm2150_vm1 = vmmov 0   ;;  %v2151_v12 = vmov 0.0  }
  0x15   : > { %v222_v3 = vld [vmem:[%s2423_s2] sm:$0xff]  ;;  %1981 = vmatprep.subr.bf16.mxu0 %v2149_v4  ;;  %1987 = vmatprep.subr.bf16.mxu1 %v2149_v4  ;;  %v2212_v5 = vpack.c.bf16 %v219_v2, %v218_v1  ;;  %v223_v6 = vld [vmem:[%s2423_s2 + $0x8] sm:$0xff]  ;;  %v221_v8 = vld [vmem:[%s2422_s1 + $0x18] sm:$0xff]  ;;  %vm236_vm2 = vcmask 261120   ;;  %s2152_s23 = smov 64   ;;  %s2153_s27 = smov 96  }
  0x16   : > { %v2223_v9 = vpack.c.bf16 %v223_v6, %v222_v3  ;;  %v224_v10 = vld [vmem:[%s2423_s2 + $0x10] sm:$0xff]  ;;  %v225_v11 = vld [vmem:[%s2423_s2 + $0x18] sm:$0xff]  ;;  %1813 = vmatprep.mubr.msk.f32.mxu0 %vm2150_vm1, %v2151_v12  ;;  %1824 = vmatprep.mubr.msk.f32.mxu1 %vm2150_vm1, %v2151_v12  ;;  %v2236_v13 = vpack.c.bf16 %v221_v8, %v220_v7  ;;  %v229_v15 = vld [vmem:[%s2196_s24] sm:$0xff]  ;;  %s2154_s28 = smov 32  }
  0x17   : > { %1983 = vmatpush3.bf16.msra.mxu0 %v2212_v5  ;;  %v2240_v14 = vpack.c.bf16 %v225_v11, %v224_v10  ;;  %v228_v16 = vld [vmem:[%s2426_s5] sm:$0xff]  ;;  %v1695_v35 = vld [vmem:[%s2196_s24 + $0x8] sm:$0xff]  ;;  %v1699_v59 = vld [vmem:[%s2196_s24 + $0x10] sm:$0xff] }
  0x18   : > { %1989 = vmatpush3.bf16.msra.mxu1 %v2223_v9  ;;  %1984 = vmatprep.subr.bf16.mxu0 %v2149_v4  ;;  %v2268_v17 = vld [vmem:[%s2425_s4] ss:$0 sm:$0xff] }
  0x19   : > { %1990 = vmatprep.subr.bf16.mxu1 %v2149_v4  ;;  %v2275_v23 = vld [vmem:[%s2424_s3] ss:$0 sm:$0xff] }
  0x1b   : > { %1986 = vmatpush3.bf16.msra.mxu0 %v2236_v13 }
  0x1c   : > { %1992 = vmatpush3.bf16.msra.mxu1 %v2240_v14  ;;  %1993 = vmatprep.subr.bf16.mxu0 %v2149_v4 }
  0x1d   : > { %1999 = vmatprep.subr.bf16.mxu1 %v2149_v4 }
  0x1e   : > { %1814 = vmatmul.mubr.msk.f32.vlgmr.msra.gmra.mrb[0].mxu0 %vm236_vm2, %v229_v15 }
  0x1f   : > { %1825 = vmatmul.mubr.msk.f32.vlgmr.msra.gmra.mrb[0].mxu1 %vm236_vm2, %v228_v16  ;;  %1995 = vmatpush3.bf16.msra.mxu0 %v2212_v5 }
  0x20   : > { %2001 = vmatpush3.bf16.msra.mxu1 %v2223_v9  ;;  %1996 = vmatprep.subr.bf16.mxu0 %v2149_v4 }
  0x21   : > { %2002 = vmatprep.subr.bf16.mxu1 %v2149_v4  ;;  %1835 = vmatprep.mubr.msk.f32.mxu0 %vm2150_vm1, %v2151_v12 }
  0x22   : > { %1846 = vmatprep.mubr.msk.f32.mxu1 %vm2150_vm1, %v2151_v12 }
  0x23   : > { %1998 = vmatpush3.bf16.msra.mxu0 %v2236_v13 }
  0x24   : > { %2004 = vmatpush3.bf16.msra.mxu1 %v2240_v14  ;;  %2005 = vmatprep.subr.bf16.mxu0 %v2149_v4 }
  0x25   : > { %2011 = vmatprep.subr.bf16.mxu1 %v2149_v4 }
  0x26   : > { %1836 = vmatmul.mubr.msk.f32.vlgmr.msra.gmra.mrb[2].mxu0 %vm236_vm2, %v1695_v35 }
  0x27   : > { %2007 = vmatpush3.bf16.msra.mxu0 %v2212_v5  ;;  %1857 = vmatprep.mubr.msk.f32.mxu0 %vm2150_vm1, %v2151_v12 }
  0x28   : > { %2008 = vmatprep.subr.bf16.mxu0 %v2149_v4 }
  0x2b   : > { %2010 = vmatpush3.bf16.msra.mxu0 %v2236_v13 }
  0x2c   : > { %2017 = vmatprep.subr.bf16.mxu0 %v2149_v4 }
  0x2e   : > { %1858 = vmatmul.mubr.msk.f32.vlgmr.msra.gmra.mrb[4].mxu0 %vm236_vm2, %v1699_v59 }
  0x2f   : > { %2019 = vmatpush3.bf16.msra.mxu0 %v2212_v5  ;;  %1879 = vmatprep.mubr.msk.f32.mxu0 %vm2150_vm1, %v2151_v12 }
  0x30   : > { %2020 = vmatprep.subr.bf16.mxu0 %v2149_v4 }
  0x33   : > { %2022 = vmatpush3.bf16.msra.mxu0 %v2236_v13 }
  0x34   : > { %2029 = vmatprep.subr.bf16.mxu0 %v2149_v4 }
  0xf1   : > { %v306_v18 = vpop.f32.mrb[0].mxu0 }
  0xf2   : > { %v385_v19 = vpop.f32.mrb[0].mxu1  ;;  %v1815_v20 = vpop.f32.mrb[1].mxu0  ;;  %v307_v24 = vadd.f32 %v2275_v23, %v306_v18 }
  0xf3   : > { %v386_v21 = vadd.f32 %v2268_v17, %v385_v19  ;;  %v1826_v22 = vpop.f32.mrb[1].mxu1 }
  0xf5   : > { %397 = vrot.lane.b32.xlu0 %v386_v21, %s2152_s23  ;;  %v389_v25 = vadd.f32 %v386_v21, %v307_v24 }
  0xf7   : > { %v1694_v26 = vmul.f32 -1.442695, %v389_v25 }
  0xf9   : > { %2092 = vpow2.f32 %v1694_v26  ;;  %v489_v43 = vpop.f32.mrb[2].mxu0  ;;  %v1703_v26 = vld [vmem:[%s2196_s24 + $0x18] sm:$0xff] }
  0xfa   : > { %v1837_v44 = vpop.f32.mrb[3].mxu0  ;;  %v490_v48 = vadd.f32 %v2275_v23, %v489_v43  ;;  %1880 = vmatmul.mubr.msk.f32.vlgmr.msra.gmra.mrb[6].mxu0 %vm236_vm2, %v1703_v26 }
  0xfb   : > { %2031 = vmatpush3.bf16.msra.mxu0 %v2212_v5  ;;  %1901 = vmatprep.mubr.msk.f32.mxu0 %vm2150_vm1, %v2151_v12 }
  0xfc   : > { %2032 = vmatprep.subr.bf16.mxu0 %v2149_v4 }
  0xff   : > { %2034 = vmatpush3.bf16.msra.mxu0 %v2236_v13 }
 0x100   : > { %2041 = vmatprep.subr.bf16.mxu0 %v2149_v4 }
 0x101   : > { %v665_v2 = vpop.f32.mrb[4].mxu0 }
 0x102   : > { %v1859_v3 = vpop.f32.mrb[5].mxu0  ;;  %v666_v10 = vadd.f32 %v2275_v23, %v665_v2 }
 0x103   : > { %v2093_v27 = vpop.eup %2092 }
 0x104   : > { %v393_v28 = vadd.f32 1.0, %v2093_v27 }
 0x106   : > { %2094 = vrcp.f32 %v393_v28 }
 0x110   : > { %v2095_v29 = vpop.eup %2094 }
 0x111   : > { %v407_v37 = vsub.f32 1.0, %v2095_v29 }
 0x167   : > { %v398_v30 = vpop.permute.xlu0 %397 }
 0x168   : > { %v400_v31 = vmul.f32 %v2095_v29, %v398_v30 }
 0x16a   : > { %402 = vrot.lane.b32.xlu0 %v400_v31, %s2152_s23 }
 0x1dc   : > { %v403_v32 = vpop.permute.xlu0 %402 }
 0x1dd   : > { %v405_v33 = vadd.f32 %v403_v32, %v307_v24 }
 0x1df   : > { %2096 = vtanh.f32 %v405_v33  ;;  %v841_v33 = vpop.f32.mrb[6].mxu0 }
 0x1e9   : > { %v2097_v34 = vpop.eup %2096 }
 0x1ea   : > { %409 = vrot.lane.b32.xlu1 %v2097_v34, %s2153_s27  ;;  %v1881_v34 = vpop.f32.mrb[7].mxu0 }
 0x1ee   : > { %413 = vrot.lane.b32.xlu1 %v228_v16, %s2154_s28 }
 0x25c   : > { %v410_v36 = vpop.permute.xlu1 %409 }
 0x25d   : > { %v412_v39 = vmul.f32 %v410_v36, %v407_v37 }
 0x260   : > { %v414_v38 = vpop.permute.xlu1 %413 }
 0x261   : > { %v416_v40 = vmul.f32 %v2095_v29, %v414_v38  ;;  %v842_v38 = vadd.f32 %v2275_v23, %v841_v33 }
 0x263   : > { %v417_v41 = vadd.f32 %v416_v40, %v412_v39 }
 0x265   : > { %494 = vrot.lane.b32.xlu0 %v417_v41, %s2153_s27 }
 0x2d7   : > { %v495_v42 = vpop.permute.xlu0 %494 }
 0x2d8   : > { %1847 = vmatmul.mubr.msk.f32.vlgmr.msra.gmra.mrb[2].mxu1 %vm236_vm2, %v495_v42 }
 0x2d9   : > { %2013 = vmatpush3.bf16.msra.mxu1 %v2223_v9  ;;  %1868 = vmatprep.mubr.msk.f32.mxu1 %vm2150_vm1, %v2151_v12 }
 0x2da   : > { %2014 = vmatprep.subr.bf16.mxu1 %v2149_v4 }
 0x2dd   : > { %2016 = vmatpush3.bf16.msra.mxu1 %v2240_v14 }
 0x2de   : > { %2023 = vmatprep.subr.bf16.mxu1 %v2149_v4 }
 0x3ab   : > { %v564_v45 = vpop.f32.mrb[2].mxu1 }
 0x3ac   : > { %v565_v46 = vadd.f32 %v2268_v17, %v564_v45  ;;  %v1848_v47 = vpop.f32.mrb[3].mxu1 }
 0x3ae   : > { %576 = vrot.lane.b32.xlu1 %v565_v46, %s2152_s23  ;;  %v568_v49 = vadd.f32 %v565_v46, %v490_v48 }
 0x3b0   : > { %v1698_v50 = vmul.f32 -1.442695, %v568_v49  ;;  %v1707_v49 = vld [vmem:[%s2196_s24 + $0x20] sm:$0xff] }
 0x3b1   : > { %1902 = vmatmul.mubr.msk.f32.vlgmr.msra.gmra.mrb[8].mxu0 %vm236_vm2, %v1707_v49 }
 0x3b2   : > { %2098 = vpow2.f32 %v1698_v50  ;;  %2043 = vmatpush3.bf16.msra.mxu0 %v2212_v5  ;;  %1923 = vmatprep.mubr.msk.f32.mxu0 %vm2150_vm1, %v2151_v12 }
 0x3b3   : > { %2044 = vmatprep.subr.bf16.mxu0 %v2149_v4 }
 0x3b6   : > { %2046 = vmatpush3.bf16.msra.mxu0 %v2236_v13 }
 0x3b7   : > { %2053 = vmatprep.subr.bf16.mxu0 %v2149_v4 }
 0x3bc   : > { %v2099_v51 = vpop.eup %2098 }
 0x3bd   : > { %v572_v52 = vadd.f32 1.0, %v2099_v51 }
 0x3bf   : > { %2100 = vrcp.f32 %v572_v52 }
 0x3c9   : > { %v2101_v53 = vpop.eup %2100 }
 0x3ca   : > { %v586_v60 = vsub.f32 1.0, %v2101_v53  ;;  %v592_v62 = vmul.f32 %v2101_v53, %v417_v41 }
 0x420   : > { %v577_v54 = vpop.permute.xlu1 %576 }
 0x421   : > { %v579_v55 = vmul.f32 %v2101_v53, %v577_v54 }
 0x423   : > { %581 = vrot.lane.b32.xlu0 %v579_v55, %s2152_s23 }
 0x495   : > { %v582_v56 = vpop.permute.xlu0 %581 }
 0x496   : > { %v584_v57 = vadd.f32 %v582_v56, %v490_v48  ;;  %v1017_v56 = vpop.f32.mrb[8].mxu0 }
 0x498   : > { %2102 = vtanh.f32 %v584_v57  ;;  %v1903_v57 = vpop.f32.mrb[9].mxu0 }
 0x4a2   : > { %v2103_v58 = vpop.eup %2102 }
 0x4a3   : > { %588 = vrot.lane.b32.xlu1 %v2103_v58, %s2153_s27 }
 0x515   : > { %v589_v61 = vpop.permute.xlu1 %588 }
 0x516   : > { %v591_v63 = vmul.f32 %v589_v61, %v586_v60  ;;  %v1018_v61 = vadd.f32 %v2275_v23, %v1017_v56  ;;  %v1719_v56 = vld [vmem:[%s2196_s24 + $0x38] sm:$0xff] }
 0x518   : > { %v593_v0 = vadd.f32 %v592_v62, %v591_v63 }
 0x51a   : > { %670 = vrot.lane.b32.xlu0 %v593_v0, %s2153_s27 }
 0x58c   : > { %v671_v1 = vpop.permute.xlu0 %670 }
 0x58d   : > { %1869 = vmatmul.mubr.msk.f32.vlgmr.msra.gmra.mrb[4].mxu1 %vm236_vm2, %v671_v1 }
 0x58e   : > { %2025 = vmatpush3.bf16.msra.mxu1 %v2223_v9  ;;  %1890 = vmatprep.mubr.msk.f32.mxu1 %vm2150_vm1, %v2151_v12 }
 0x58f   : > { %2026 = vmatprep.subr.bf16.mxu1 %v2149_v4 }
 0x592   : > { %2028 = vmatpush3.bf16.msra.mxu1 %v2240_v14 }
 0x593   : > { %2035 = vmatprep.subr.bf16.mxu1 %v2149_v4 }
 0x660   : > { %v740_v6 = vpop.f32.mrb[4].mxu1 }
 0x661   : > { %v741_v7 = vadd.f32 %v2268_v17, %v740_v6  ;;  %v1870_v8 = vpop.f32.mrb[5].mxu1 }
 0x663   : > { %752 = vrot.lane.b32.xlu1 %v741_v7, %s2152_s23  ;;  %v744_v11 = vadd.f32 %v741_v7, %v666_v10 }
 0x665   : > { %v1702_v15 = vmul.f32 -1.442695, %v744_v11  ;;  %v1711_v11 = vld [vmem:[%s2196_s24 + $0x28] sm:$0xff] }
 0x666   : > { %1924 = vmatmul.mubr.msk.f32.vlgmr.msra.gmra.mrb[10].mxu0 %vm236_vm2, %v1711_v11 }
 0x667   : > { %2104 = vpow2.f32 %v1702_v15  ;;  %2055 = vmatpush3.bf16.msra.mxu0 %v2212_v5  ;;  %1945 = vmatprep.mubr.msk.f32.mxu0 %vm2150_vm1, %v2151_v12 }
 0x668   : > { %2056 = vmatprep.subr.bf16.mxu0 %v2149_v4 }
 0x66b   : > { %2058 = vmatpush3.bf16.msra.mxu0 %v2236_v13 }
 0x66c   : > { %2065 = vmatprep.subr.bf16.mxu0 %v2149_v4 }
 0x671   : > { %v2105_v16 = vpop.eup %2104 }
 0x672   : > { %v748_v18 = vadd.f32 1.0, %v2105_v16 }
 0x674   : > { %2106 = vrcp.f32 %v748_v18 }
 0x67e   : > { %v2107_v19 = vpop.eup %2106 }
 0x67f   : > { %v762_v27 = vsub.f32 1.0, %v2107_v19  ;;  %v768_v29 = vmul.f32 %v2107_v19, %v593_v0 }
 0x6d5   : > { %v753_v20 = vpop.permute.xlu1 %752 }
 0x6d6   : > { %v755_v21 = vmul.f32 %v2107_v19, %v753_v20 }
 0x6d8   : > { %757 = vrot.lane.b32.xlu0 %v755_v21, %s2152_s23 }
 0x74a   : > { %v758_v22 = vpop.permute.xlu0 %757 }
 0x74b   : > { %v760_v24 = vadd.f32 %v758_v22, %v666_v10  ;;  %v1193_v22 = vpop.f32.mrb[10].mxu0 }
 0x74d   : > { %2108 = vtanh.f32 %v760_v24  ;;  %v1925_v24 = vpop.f32.mrb[11].mxu0 }
 0x757   : > { %v2109_v25 = vpop.eup %2108 }
 0x758   : > { %764 = vrot.lane.b32.xlu1 %v2109_v25, %s2153_s27 }
 0x7ca   : > { %v765_v28 = vpop.permute.xlu1 %764 }
 0x7cb   : > { %v767_v30 = vmul.f32 %v765_v28, %v762_v27  ;;  %v1194_v28 = vadd.f32 %v2275_v23, %v1193_v22 }
 0x7cd   : > { %v769_v31 = vadd.f32 %v768_v29, %v767_v30 }
 0x7cf   : > { %846 = vrot.lane.b32.xlu0 %v769_v31, %s2153_s27 }
 0x841   : > { %v847_v32 = vpop.permute.xlu0 %846 }
 0x842   : > { %1891 = vmatmul.mubr.msk.f32.vlgmr.msra.gmra.mrb[6].mxu1 %vm236_vm2, %v847_v32 }
 0x843   : > { %2037 = vmatpush3.bf16.msra.mxu1 %v2223_v9  ;;  %1912 = vmatprep.mubr.msk.f32.mxu1 %vm2150_vm1, %v2151_v12 }
 0x844   : > { %2038 = vmatprep.subr.bf16.mxu1 %v2149_v4 }
 0x847   : > { %2040 = vmatpush3.bf16.msra.mxu1 %v2240_v14 }
 0x848   : > { %2047 = vmatprep.subr.bf16.mxu1 %v2149_v4 }
 0x915   : > { %v916_v35 = vpop.f32.mrb[6].mxu1 }
 0x916   : > { %v917_v36 = vadd.f32 %v2268_v17, %v916_v35  ;;  %v1892_v37 = vpop.f32.mrb[7].mxu1 }
 0x918   : > { %928 = vrot.lane.b32.xlu1 %v917_v36, %s2152_s23  ;;  %v920_v39 = vadd.f32 %v917_v36, %v842_v38 }
 0x91a   : > { %v1706_v40 = vmul.f32 -1.442695, %v920_v39  ;;  %v1715_v39 = vld [vmem:[%s2196_s24 + $0x30] sm:$0xff] }
 0x91b   : > { %1946 = vmatmul.mubr.msk.f32.vlgmr.msra.gmra.mrb[12].mxu0 %vm236_vm2, %v1715_v39 }
 0x91c   : > { %2110 = vpow2.f32 %v1706_v40  ;;  %2067 = vmatpush3.bf16.msra.mxu0 %v2212_v5  ;;  %1967 = vmatprep.mubr.msk.f32.mxu0 %vm2150_vm1, %v2151_v12 }
 0x91d   : > { %2068 = vmatprep.subr.bf16.mxu0 %v2149_v4 }
 0x920   : > { %2070 = vmatpush3.bf16.msra.mxu0 %v2236_v13 }
 0x923   : > { %1968 = vmatmul.mubr.msk.f32.vlgmr.msra.gmra.mrb[14].mxu0 %vm236_vm2, %v1719_v56 }
 0x926   : > { %v2111_v41 = vpop.eup %2110 }
 0x927   : > { %v924_v42 = vadd.f32 1.0, %v2111_v41 }
 0x929   : > { %2112 = vrcp.f32 %v924_v42 }
 0x933   : > { %v2113_v43 = vpop.eup %2112 }
 0x934   : > { %v938_v50 = vsub.f32 1.0, %v2113_v43  ;;  %v944_v52 = vmul.f32 %v2113_v43, %v769_v31 }
 0x98a   : > { %v929_v44 = vpop.permute.xlu1 %928 }
 0x98b   : > { %v931_v45 = vmul.f32 %v2113_v43, %v929_v44 }
 0x98d   : > { %933 = vrot.lane.b32.xlu0 %v931_v45, %s2152_s23 }
 0x9ee   : > { %v1369_v5 = vpop.f32.mrb[12].mxu0 }
 0x9ef   : > { %v1947_v13 = vpop.f32.mrb[13].mxu0  ;;  %v1370_v49 = vadd.f32 %v2275_v23, %v1369_v5 }
 0x9ff   : > { %v934_v46 = vpop.permute.xlu0 %933 }
 0xa00   : > { %v936_v47 = vadd.f32 %v934_v46, %v842_v38 }
 0xa02   : > { %2114 = vtanh.f32 %v936_v47 }
 0xa0c   : > { %v2115_v48 = vpop.eup %2114 }
 0xa0d   : > { %940 = vrot.lane.b32.xlu1 %v2115_v48, %s2153_s27 }
 0xa7f   : > { %v941_v51 = vpop.permute.xlu1 %940 }
 0xa80   : > { %v943_v53 = vmul.f32 %v941_v51, %v938_v50 }
 0xa82   : > { %v945_v54 = vadd.f32 %v944_v52, %v943_v53 }
 0xa84   : > { %1022 = vrot.lane.b32.xlu0 %v945_v54, %s2153_s27 }
 0xaf6   : > { %v1023_v55 = vpop.permute.xlu0 %1022 }
 0xaf7   : > { %1913 = vmatmul.mubr.msk.f32.vlgmr.msra.gmra.mrb[8].mxu1 %vm236_vm2, %v1023_v55 }
 0xaf8   : > { %2049 = vmatpush3.bf16.msra.mxu1 %v2223_v9  ;;  %1934 = vmatprep.mubr.msk.f32.mxu1 %vm2150_vm1, %v2151_v12 }
 0xaf9   : > { %2050 = vmatprep.subr.bf16.mxu1 %v2149_v4 }
 0xafc   : > { %2052 = vmatpush3.bf16.msra.mxu1 %v2240_v14 }
 0xafd   : > { %2059 = vmatprep.subr.bf16.mxu1 %v2149_v4 }
 0xbca   : > { %v1092_v58 = vpop.f32.mrb[8].mxu1 }
 0xbcb   : > { %v1093_v59 = vadd.f32 %v2268_v17, %v1092_v58  ;;  %v1914_v60 = vpop.f32.mrb[9].mxu1 }
 0xbcd   : > { %1104 = vrot.lane.b32.xlu1 %v1093_v59, %s2152_s23  ;;  %v1096_v62 = vadd.f32 %v1093_v59, %v1018_v61 }
 0xbcf   : > { %v1710_v63 = vmul.f32 -1.442695, %v1096_v62 }
 0xbd1   : > { %2116 = vpow2.f32 %v1710_v63  ;;  %v1545_v63 = vpop.f32.mrb[14].mxu0 }
 0xbdb   : > { %v2117_v0 = vpop.eup %2116 }
 0xbdc   : > { %v1100_v1 = vadd.f32 1.0, %v2117_v0  ;;  %v1969_v0 = vpop.f32.mrb[15].mxu0 }
 0xbde   : > { %2118 = vrcp.f32 %v1100_v1 }
 0xbe8   : > { %v2119_v2 = vpop.eup %2118 }
 0xbe9   : > { %v1114_v15 = vsub.f32 1.0, %v2119_v2  ;;  %v1120_v18 = vmul.f32 %v2119_v2, %v945_v54 }
 0xc3f   : > { %v1105_v3 = vpop.permute.xlu1 %1104 }
 0xc40   : > { %v1107_v6 = vmul.f32 %v2119_v2, %v1105_v3 }
 0xc42   : > { %1109 = vrot.lane.b32.xlu0 %v1107_v6, %s2152_s23  ;;  %v1546_v6 = vadd.f32 %v2275_v23, %v1545_v63 }
 0xcb4   : > { %v1110_v7 = vpop.permute.xlu0 %1109 }
 0xcb5   : > { %v1112_v8 = vadd.f32 %v1110_v7, %v1018_v61 }
 0xcb7   : > { %2120 = vtanh.f32 %v1112_v8 }
 0xcc1   : > { %v2121_v10 = vpop.eup %2120 }
 0xcc2   : > { %1116 = vrot.lane.b32.xlu1 %v2121_v10, %s2153_s27 }
 0xd34   : > { %v1117_v16 = vpop.permute.xlu1 %1116 }
 0xd35   : > { %v1119_v19 = vmul.f32 %v1117_v16, %v1114_v15 }
 0xd37   : > { %v1121_v20 = vadd.f32 %v1120_v18, %v1119_v19 }
 0xd39   : > { %1198 = vrot.lane.b32.xlu0 %v1121_v20, %s2153_s27 }
 0xdab   : > { %v1199_v21 = vpop.permute.xlu0 %1198 }
 0xdac   : > { %1935 = vmatmul.mubr.msk.f32.vlgmr.msra.gmra.mrb[10].mxu1 %vm236_vm2, %v1199_v21 }
 0xdad   : > { %2061 = vmatpush3.bf16.msra.mxu1 %v2223_v9  ;;  %1956 = vmatprep.mubr.msk.f32.mxu1 %vm2150_vm1, %v2151_v12 }
 0xdae   : > { %2062 = vmatprep.subr.bf16.mxu1 %v2149_v4 }
 0xdb1   : > { %2064 = vmatpush3.bf16.msra.mxu1 %v2240_v14 }
 0xdb2   : > { %2071 = vmatprep.subr.bf16.mxu1 %v2149_v4 }
 0xe7f   : > { %v1268_v25 = vpop.f32.mrb[10].mxu1 }
 0xe80   : > { %v1269_v26 = vadd.f32 %v2268_v17, %v1268_v25  ;;  %v1936_v27 = vpop.f32.mrb[11].mxu1 }
 0xe82   : > { %1280 = vrot.lane.b32.xlu1 %v1269_v26, %s2152_s23  ;;  %v1272_v29 = vadd.f32 %v1269_v26, %v1194_v28 }
 0xe84   : > { %v1714_v30 = vmul.f32 -1.442695, %v1272_v29 }
 0xe86   : > { %2122 = vpow2.f32 %v1714_v30 }
 0xe90   : > { %v2123_v31 = vpop.eup %2122 }
 0xe91   : > { %v1276_v32 = vadd.f32 1.0, %v2123_v31 }
 0xe93   : > { %2124 = vrcp.f32 %v1276_v32 }
 0xe9d   : > { %v2125_v33 = vpop.eup %2124 }
 0xe9e   : > { %v1290_v40 = vsub.f32 1.0, %v2125_v33  ;;  %v1296_v42 = vmul.f32 %v2125_v33, %v1121_v20 }
 0xef4   : > { %v1281_v34 = vpop.permute.xlu1 %1280 }
 0xef5   : > { %v1283_v35 = vmul.f32 %v2125_v33, %v1281_v34 }
 0xef7   : > { %1285 = vrot.lane.b32.xlu0 %v1283_v35, %s2152_s23 }
 0xf69   : > { %v1286_v36 = vpop.permute.xlu0 %1285 }
 0xf6a   : > { %v1288_v37 = vadd.f32 %v1286_v36, %v1194_v28 }
 0xf6c   : > { %2126 = vtanh.f32 %v1288_v37 }
 0xf76   : > { %v2127_v38 = vpop.eup %2126 }
 0xf77   : > { %1292 = vrot.lane.b32.xlu1 %v2127_v38, %s2153_s27 }
 0xfe9   : > { %v1293_v41 = vpop.permute.xlu1 %1292 }
 0xfea   : > { %v1295_v43 = vmul.f32 %v1293_v41, %v1290_v40 }
 0xfec   : > { %v1297_v44 = vadd.f32 %v1296_v42, %v1295_v43 }
 0xfee   : > { %1374 = vrot.lane.b32.xlu0 %v1297_v44, %s2153_s27 }
0x1060   : > { %v1375_v45 = vpop.permute.xlu0 %1374 }
0x1061   : > { %1957 = vmatmul.mubr.msk.f32.vlgmr.msra.gmra.mrb[12].mxu1 %vm236_vm2, %v1375_v45 }
0x1062   : > { %2073 = vmatpush3.bf16.msra.mxu1 %v2223_v9  ;;  %1978 = vmatprep.mubr.msk.f32.mxu1 %vm2150_vm1, %v2151_v12 }
0x1063   : > { %2074 = vmatprep.subr.bf16.mxu1 %v2149_v4 }
0x1066   : > { %2076 = vmatpush3.bf16.msra.mxu1 %v2240_v14 }
0x1134   : > { %v1444_v46 = vpop.f32.mrb[12].mxu1 }
0x1135   : > { %v1445_v47 = vadd.f32 %v2268_v17, %v1444_v46  ;;  %v1958_v48 = vpop.f32.mrb[13].mxu1 }
0x1137   : > { %1456 = vrot.lane.b32.xlu1 %v1445_v47, %s2152_s23  ;;  %v1448_v50 = vadd.f32 %v1445_v47, %v1370_v49 }
0x1139   : > { %v1718_v9 = vmul.f32 -1.442695, %v1448_v50 }
0x113b   : > { %2128 = vpow2.f32 %v1718_v9 }
0x1145   : > { %v2129_v51 = vpop.eup %2128 }
0x1146   : > { %v1452_v12 = vadd.f32 1.0, %v2129_v51 }
0x1148   : > { %2130 = vrcp.f32 %v1452_v12 }
0x1152   : > { %v2131_v4 = vpop.eup %2130 }
0x1153   : > { %v1466_v57 = vsub.f32 1.0, %v2131_v4  ;;  %v1472_v59 = vmul.f32 %v2131_v4, %v1297_v44 }
0x11a9   : > { %v1457_v52 = vpop.permute.xlu1 %1456 }
0x11aa   : > { %v1459_v14 = vmul.f32 %v2131_v4, %v1457_v52 }
0x11ac   : > { %1461 = vrot.lane.b32.xlu0 %v1459_v14, %s2152_s23 }
0x121e   : > { %v1462_v53 = vpop.permute.xlu0 %1461 }
0x121f   : > { %v1464_v54 = vadd.f32 %v1462_v53, %v1370_v49 }
0x1221   : > { %2132 = vtanh.f32 %v1464_v54 }
0x122b   : > { %v2133_v55 = vpop.eup %2132 }
0x122c   : > { %1468 = vrot.lane.b32.xlu1 %v2133_v55, %s2153_s27 }
0x129e   : > { %v1469_v58 = vpop.permute.xlu1 %1468 }
0x129f   : > { %v1471_v60 = vmul.f32 %v1469_v58, %v1466_v57 }
0x12a1   : > { %v1473_v61 = vadd.f32 %v1472_v59, %v1471_v60 }
0x12a3   : > { %1550 = vrot.lane.b32.xlu0 %v1473_v61, %s2153_s27 }
0x1315   : > { %v1551_v62 = vpop.permute.xlu0 %1550 }
0x1316   : > { %1979 = vmatmul.mubr.msk.f32.vlgmr.msra.gmra.mrb[14].mxu1 %vm236_vm2, %v1551_v62 }
0x13e9   : > { %v1620_v1 = vpop.f32.mrb[14].mxu1 }
0x13ea   : > { %v1621_v2 = vadd.f32 %v2268_v17, %v1620_v1  ;;  %v1980_v3 = vpop.f32.mrb[15].mxu1 }
0x13ec   : > { %1632 = vrot.lane.b32.xlu1 %v1621_v2, %s2152_s23  ;;  %v1624_v7 = vadd.f32 %v1621_v2, %v1546_v6 }
0x13ee   : > { %v1722_v8 = vmul.f32 -1.442695, %v1624_v7 }
0x13f0   : > { %2134 = vpow2.f32 %v1722_v8 }
0x13fa   : > { %v2135_v10 = vpop.eup %2134 }
0x13fb   : > { %v1628_v11 = vadd.f32 1.0, %v2135_v10 }
0x13fd   : > { %2136 = vrcp.f32 %v1628_v11 }
0x1407   : > { %v2137_v15 = vpop.eup %2136 }
0x1408   : > { %v1642_v21 = vsub.f32 1.0, %v2137_v15  ;;  %v1648_v23 = vmul.f32 %v2137_v15, %v1473_v61 }
0x145e   : > { %v1633_v16 = vpop.permute.xlu1 %1632 }
0x145f   : > { %v1635_v18 = vmul.f32 %v2137_v15, %v1633_v16 }
0x1461   : > { %1637 = vrot.lane.b32.xlu0 %v1635_v18, %s2152_s23 }
0x14d3   : > { %v1638_v19 = vpop.permute.xlu0 %1637 }
0x14d4   : > { %v1640_v20 = vadd.f32 %v1638_v19, %v1546_v6 }
0x14d6   : > { %2138 = vtanh.f32 %v1640_v20 }
0x14e0   : > { %v2139_v17 = vpop.eup %2138 }
0x14e1   : > { %1644 = vrot.lane.b32.xlu1 %v2139_v17, %s2153_s27 }
0x1553   : > { %v1645_v22 = vpop.permute.xlu1 %1644 }
0x1554   : > { %v1647_v24 = vmul.f32 %v1645_v22, %v1642_v21 }
0x1556   : > { %v1649_v25 = vadd.f32 %v1648_v23, %v1647_v24 }
0x1558   : > { %1651 = vrot.lane.b32.xlu0 %v1649_v25, %s2153_s27 }
0x15ca   : > { %v1652_v26 = vpop.permute.xlu0 %1651 }
0x15cb   : > { %1654 = vst.msk [vmem:[%s2426_s5] sm:$0xff] %vm236_vm2, %v1652_v26 }
0x15cc PF: > { %s15_s18 = sadd.s32 1, %s2146_s18  }
0x15cd   : > { %p12_p5 = scmp.ge.s32.totalorder %s15_s18, 4  }
0x15cf   :  { %14 = sbr.rel (!%p12_p5) target bundleno = 1 (0x1), region = 77 }

</bundles_post_ra>
